<compile_context>
chip_gen: v6e
topology: v6e:2x2x1
jax: 0.10.0
libtpu: 0.0.40
codegen_flags: <defaults>
</compile_context>

<pallas_src>
import functools
import math

import jax
import jax.numpy as jnp
from jax.experimental import pallas as pl
from jax.experimental.pallas import tpu as pltpu


def make_freq_mat(in_features, n_freqs):
    """Deterministic parameter construction, mirroring the torch __init__."""
    if isinstance(n_freqs, (int, float)):
        n_freqs = [int(n_freqs) for _ in range(in_features)]
    eye = jnp.eye(in_features, dtype=jnp.float32)
    cols = []
    for i in range(in_features):
        cols.append(
            jnp.stack([eye[i] * (2.0 ** j) for j in range(n_freqs[i])], axis=-1))
    freq_mat = jnp.concatenate(cols, axis=-1)  # (F, sum(n_freqs))
    return freq_mat, n_freqs


# ---------------------------------------------------------------------------
# Kernel
# ---------------------------------------------------------------------------

def _pos_enc_kernel(x_ref, w_ref, o_ref, *, include_inputs):
    """x:(tm, F), w:(F, K), o:(tm, F*include_inputs + 2K).

    Tiny matmul on the (otherwise idle) MXU preserves the module semantics
    for arbitrary / trainable freq_mat; cos/sin stay on the natural (tm, K)
    layout and are written straight into slices of the output tile.
    """
    F = x_ref.shape[-1]
    K = w_ref.shape[-1]
    x = x_ref[...]                                               # (tm, F)
    mapped = jnp.dot(x, w_ref[...],
                     preferred_element_type=jnp.float32)         # (tm, K)
    base = 0
    if include_inputs:
        o_ref[:, :F] = x.astype(o_ref.dtype)
        base = F
    o_ref[:, base:base + K] = jnp.cos(mapped).astype(o_ref.dtype)
    o_ref[:, base + K:base + 2 * K] = jnp.sin(mapped).astype(o_ref.dtype)


# ---------------------------------------------------------------------------
# Launcher / wrapper
# ---------------------------------------------------------------------------

def _round_up(x, m):
    return (x + m - 1) // m * m


def _choose_tm(M, tm_max=16384, min_steps=2, target_steps=8):
    """Row tile: large (amortize ~0.35us/step overhead), multiple of 128,
    capped so the grid keeps >= min_steps steps when M allows it (v7x has
    2 TensorCores; a single grid step would leave one idle)."""
    tm = _round_up(pl.cdiv(M, target_steps), 128)
    tm = min(max(tm, 128), tm_max)
    if M > min_steps * 128:
        tm = min(tm, _round_up(pl.cdiv(M, min_steps), 128))
    return tm


def pos_encoding(inputs, freq_mat, include_inputs=True, out_dtype=None, tm=None):
    """inputs: (..., F); freq_mat: (F, K). Returns (..., F*include_inputs + 2K).

    out_dtype=jnp.bfloat16 halves the dominant HBM write bytes (recommended
    when the consumer accepts bf16); default keeps the input dtype.
    """
    *lead, F = inputs.shape
    K = freq_mat.shape[1]
    out_features = F * int(include_inputs) + 2 * K
    out_dtype = inputs.dtype if out_dtype is None else jnp.dtype(out_dtype)

    M = math.prod(lead) if lead else 1
    x2d = inputs.reshape(M, F)

    if tm is None:
        tm = _choose_tm(M)
    else:
        tm = max(128, _round_up(int(tm), 128))

    grid = (pl.cdiv(M, tm),)  # ragged tail block handled by Pallas (no pad/slice)

    kernel = functools.partial(_pos_enc_kernel, include_inputs=include_inputs)
    out2d = pl.pallas_call(
        kernel,
        out_shape=jax.ShapeDtypeStruct((M, out_features), out_dtype),
        grid_spec=pltpu.PrefetchScalarGridSpec(
            num_scalar_prefetch=0,
            grid=grid,
            in_specs=[
                pl.BlockSpec((tm, F), lambda i: (i, 0)),   # rows tile
                pl.BlockSpec((F, K), lambda i: (0, 0)),    # freq_mat resident
            ],
            out_specs=pl.BlockSpec((tm, out_features), lambda i: (i, 0)),
        ),
        compiler_params=pltpu.CompilerParams(
            dimension_semantics=("parallel",),     # shard rows across TCs on v7x
            vmem_limit_bytes=48 * 1024 * 1024,     # headroom under v7x 64 MiB VMEM
        ),
    )(x2d, freq_mat)

    return out2d.reshape(*lead, out_features)


def pos_encoding_ref(inputs, freq_mat, include_inputs=True):
    outs = []
    if include_inputs:
        outs.append(inputs)
    mapped = inputs @ freq_mat
    outs.append(jnp.cos(mapped))
    outs.append(jnp.sin(mapped))
    return jnp.concatenate(outs, axis=-1)


if __name__ == "__main__":
    in_features = 4
    n_freqs = 8
    include_inputs = True

    freq_mat, n_freqs_list = make_freq_mat(in_features, n_freqs)

    key = jax.random.PRNGKey(0)
    # batch=2, H=16, W=16, in_features=4 -> 512 rows for the kernel (grid of 4)
    x = jax.random.normal(key, (2, 16, 16, in_features), dtype=jnp.float32)

    out = pos_encoding(x, freq_mat, include_inputs=include_inputs)
    out = jax.block_until_ready(out)

    expected_out = in_features * int(include_inputs) + 2 * sum(n_freqs_list)
    assert out.shape == (2, 16, 16, expected_out), out.shape
    ref = pos_encoding_ref(x, freq_mat, include_inputs=include_inputs)
    assert jnp.allclose(out, ref, atol=1e-5, rtol=1e-5), "mismatch vs reference"

    # Ragged tail (M % tm != 0, handled by Pallas edge block) + include_inputs=False.
    x2 = jax.random.normal(jax.random.PRNGKey(1), (3, 10, in_features),
                           dtype=jnp.float32)
    out2 = jax.block_until_ready(pos_encoding(x2, freq_mat, include_inputs=False))
    ref2 = pos_encoding_ref(x2, freq_mat, include_inputs=False)
    assert out2.shape == ref2.shape, (out2.shape, ref2.shape)
    assert jnp.allclose(out2, ref2, atol=1e-5, rtol=1e-5), "mismatch (ragged tail)"

    # bf16 output path (halves HBM write bytes); loose tolerance for bf16 store.
    out3 = jax.block_until_ready(
        pos_encoding(x, freq_mat, include_inputs=include_inputs,
                     out_dtype=jnp.bfloat16))
    assert out3.dtype == jnp.bfloat16
    assert jnp.allclose(out3.astype(jnp.float32), ref, atol=5e-2, rtol=5e-2), \
        "mismatch (bf16 output)"

    print("KERNEL_OK")
</pallas_src>

<mosaic_0001>
module attributes {stable_mosaic.version = 11 : i64} {
  func.func @_pos_enc_kernel(%arg0: i32, %arg1: memref<128x4xf32, #tpu.memory_space<vmem>>, %arg2: memref<4x32xf32, #tpu.memory_space<vmem>>, %arg3: memref<128x68xf32, #tpu.memory_space<vmem>>) attributes {dimension_semantics = [#tpu.dimension_semantics<parallel>], iteration_bounds = array<i64: 4>, scalar_prefetch = 0 : i64, scratch_operands = 0 : i64, tpu.core_type = #tpu.core_type<tc>, window_params = [{transform_indices = @transform_0, window_bounds = array<i64: 128, 4>}, {pipeline_mode = #tpu.pipeline_mode<synchronous>, transform_indices = @transform_1, window_bounds = array<i64: 4, 32>}, {transform_indices = @transform_2, window_bounds = array<i64: 128, 68>}]} {
    %c0 = arith.constant 0 : index
    %c0_0 = arith.constant 0 : index
    %0 = vector.load %arg1[%c0, %c0_0] : memref<128x4xf32, #tpu.memory_space<vmem>>, vector<128x4xf32>
    %c0_1 = arith.constant 0 : index
    %c0_2 = arith.constant 0 : index
    %1 = vector.load %arg2[%c0_1, %c0_2] : memref<4x32xf32, #tpu.memory_space<vmem>>, vector<4x32xf32>
    %cst = arith.constant dense<0.000000e+00> : vector<128x32xf32>
    %2 = tpu.matmul %0, %1, %cst {dimension_numbers = #tpu.dot_dimension_numbers<[1], [0], [0], [1], [0, 0, 1, 1], [], []>} : vector<128x4xf32>, vector<4x32xf32>, vector<128x32xf32> -> vector<128x32xf32>
    %c0_3 = arith.constant 0 : index
    %c0_4 = arith.constant 0 : index
    %3 = vector.load %arg3[%c0_3, %c0_4] : memref<128x68xf32, #tpu.memory_space<vmem>>, vector<128x4xf32>
    tpu.vector_store %arg3[%c0_3, %c0_4], %0 {strides = array<i32>} : memref<128x68xf32, #tpu.memory_space<vmem>>, vector<128x4xf32>,
    %4 = math.cos %2 : vector<128x32xf32>
    %c0_5 = arith.constant 0 : index
    %c4 = arith.constant 4 : index
    %5 = vector.load %arg3[%c0_5, %c4] : memref<128x68xf32, #tpu.memory_space<vmem>>, vector<128x32xf32>
    tpu.vector_store %arg3[%c0_5, %c4], %4 {strides = array<i32>} : memref<128x68xf32, #tpu.memory_space<vmem>>, vector<128x32xf32>,
    %6 = math.sin %2 : vector<128x32xf32>
    %c0_6 = arith.constant 0 : index
    %c36 = arith.constant 36 : index
    %7 = vector.load %arg3[%c0_6, %c36] : memref<128x68xf32, #tpu.memory_space<vmem>>, vector<128x32xf32>
    tpu.vector_store %arg3[%c0_6, %c36], %6 {strides = array<i32>} : memref<128x68xf32, #tpu.memory_space<vmem>>, vector<128x32xf32>,
    return
  }
  func.func @transform_0(%arg0: i32) -> (i32, i32) {
    %c0_i32 = arith.constant 0 : i32
    %c0_i32_0 = arith.constant 0 : i32
    return %arg0, %c0_i32 : i32, i32
  }
  func.func @transform_1(%arg0: i32) -> (i32, i32) {
    %c0_i32 = arith.constant 0 : i32
    %c0_i32_0 = arith.constant 0 : i32
    %c0_i32_1 = arith.constant 0 : i32
    return %c0_i32, %c0_i32_0 : i32, i32
  }
  func.func @transform_2(%arg0: i32) -> (i32, i32) {
    %c0_i32 = arith.constant 0 : i32
    %c0_i32_0 = arith.constant 0 : i32
    return %arg0, %c0_i32 : i32, i32
  }
}

</mosaic_0001>

<bundles_post_ra>
// kernel: tpu_custom_call.1
= control target key start
LH: loop header
LB: loop body
LE: loop exit
PB: predicated region body
PF: predicated region fallthrough
CT: control target
= control target key end

     0   :  { %s4284_s9 = smov 0   ;;  %s6156_s0 = inlined_call_operand.vmem [shape: f32[512,4], index: 0, kind: input, shape index: {}]   ;;  %s6157_s1 = inlined_call_operand.vmem [shape: f32[4,32], index: 1, kind: input, shape index: {}]   ;;  %s6158_s2 = inlined_call_operand.vmem [shape: f32[512,68], index: 2, kind: output, shape index: {}]  }
   0x1 LB: > { %s3908_s10 = sadd.s32 4294967295, %s4259_s9   ;;  %p3912_p0 = scmp.ge.s32.totalorder %s4259_s9, 1  ;;  %s4259_s9 = sphi %s4284_s9, %s12_s9  }
   0x2   : > { %p113_p1 = scmp.lt.s32.totalorder %s4259_s9, 5 }
   0x4   : > { %p114_p2 = pnand %p3912_p0, %p113_p1 }
   0x6   : > { %117 = sbr.rel (%p114_p2) target bundleno = 769 (0x301), region = 28 }
   0xb   : > { %v163_v0 = vld [vmem:[%s6157_s1] sm:$0xf]  ;;  %vm213_vm0 = vcmask 1043456   ;;  %s3913_s13 = sshll.u32 %s3908_s10, 4  ;;  %vm164_vm1 = vcmask 31744   ;;  %s4267_s21 = smov 4  }
   0xc   : > { %4081 = vmatprep.subr.msk.mxu0 %vm213_vm0, %v163_v0  ;;  %4107 = vmatprep.subr.msk.mxu1 %vm213_vm0, %v163_v0  ;;  %p136_p3 = scmp.lt.s32.totalorder %s3913_s13, 63  ;;  %v6167_v52 = vmov 683565275   ;;  %v6165_v54 = vmov 2475754826   ;;  %s4268_s22 = smov 36  }
   0xd   : > { %4082 = vmatpush3.msk.msra.mxu0 %vm213_vm0, %v163_v0  ;;  %4108 = vmatpush3.msk.msra.mxu1 %vm213_vm0, %v163_v0  ;;  %v6169_v57 = vmov 2131351028   ;;  %v6173_v59 = vmov 2102212464   ;;  %v6175_v61 = vmov 920167782  }
   0xe   : > { %s6390_s13 = smov (!%p136_p3, %s3913_s13), 63 }
   0xf   : > { %s3914_s14 = sshll.u32 %s6390_s13, 3 }
  0x10   : > { %s4298_s17 = scalar_lea.vmem %s6156_s0, %s3914_s14  ;;  %s4303_s20 = scalar_lea.vmem %s6158_s2, %s3914_s14 }
  0x11   : > { %v147_v1 = vld [vmem:[%s4298_s17] sm:$0xff]  ;;  %v148_v3 = vld [vmem:[%s4298_s17 + $0x8] sm:$0xff]  ;;  %v149_v5 = vld [vmem:[%s4298_s17 + $0x10] sm:$0xff] }
  0x12   : > { %v155_v2 = vld [vmem:[%s4298_s17 + $0x40] sm:$0xff]  ;;  %4083 = vmatprep.mubr.msk.f32.mxu0 %vm164_vm1, %v147_v1  ;;  %362 = vst.msk [vmem:[%s4303_s20] sm:$0xff] %vm164_vm1, %v147_v1  ;;  %363 = vst.msk [vmem:[%s4303_s20 + $0x8] sm:$0xff] %vm164_vm1, %v148_v3  ;;  %v156_v4 = vld [vmem:[%s4298_s17 + $0x48] sm:$0xff] }
  0x13   : > { %4095 = vmatprep.mubr.msk.f32.mxu1 %vm164_vm1, %v155_v2  ;;  %370 = vst.msk [vmem:[%s4303_s20 + $0x40] sm:$0xff] %vm164_vm1, %v155_v2  ;;  %v157_v6 = vld [vmem:[%s4298_s17 + $0x50] sm:$0xff]  ;;  %4084 = vmatmul.mubr.msk.f32.vlgmr.msra.gmra.mxu0 %vm164_vm1, %v148_v3  ;;  %371 = vst.msk [vmem:[%s4303_s20 + $0x48] sm:$0xff] %vm164_vm1, %v156_v4  ;;  %v150_v7 = vld [vmem:[%s4298_s17 + $0x18] sm:$0xff] }
  0x14   : > { %4096 = vmatmul.mubr.msk.f32.vlgmr.msra.gmra.mxu1 %vm164_vm1, %v156_v4  ;;  %364 = vst.msk [vmem:[%s4303_s20 + $0x10] sm:$0xff] %vm164_vm1, %v149_v5  ;;  %372 = vst.msk [vmem:[%s4303_s20 + $0x50] sm:$0xff] %vm164_vm1, %v157_v6  ;;  %v158_v8 = vld [vmem:[%s4298_s17 + $0x58] sm:$0xff]  ;;  %v151_v9 = vld [vmem:[%s4298_s17 + $0x20] sm:$0xff]  ;;  %4086 = vmatprep.mubr.msk.f32.mxu0 %vm164_vm1, %v149_v5  ;;  %v6161_v4 = vmov 1326507024  }
  0x15   : > { %4098 = vmatprep.mubr.msk.f32.mxu1 %vm164_vm1, %v157_v6  ;;  %365 = vst.msk [vmem:[%s4303_s20 + $0x18] sm:$0xff] %vm164_vm1, %v150_v7  ;;  %373 = vst.msk [vmem:[%s4303_s20 + $0x58] sm:$0xff] %vm164_vm1, %v158_v8  ;;  %v159_v10 = vld [vmem:[%s4298_s17 + $0x60] sm:$0xff]  ;;  %v152_v11 = vld [vmem:[%s4298_s17 + $0x28] sm:$0xff] }
  0x16   : > { %366 = vst.msk [vmem:[%s4303_s20 + $0x20] sm:$0xff] %vm164_vm1, %v151_v9  ;;  %v160_v12 = vld [vmem:[%s4298_s17 + $0x68] sm:$0xff]  ;;  %374 = vst.msk [vmem:[%s4303_s20 + $0x60] sm:$0xff] %vm164_vm1, %v159_v10  ;;  %v153_v13 = vld [vmem:[%s4298_s17 + $0x30] sm:$0xff] }
  0x17   : > { %367 = vst.msk [vmem:[%s4303_s20 + $0x28] sm:$0xff] %vm164_vm1, %v152_v11  ;;  %375 = vst.msk [vmem:[%s4303_s20 + $0x68] sm:$0xff] %vm164_vm1, %v160_v12  ;;  %v161_v14 = vld [vmem:[%s4298_s17 + $0x70] sm:$0xff]  ;;  %v154_v15 = vld [vmem:[%s4298_s17 + $0x38] sm:$0xff]  ;;  %4087 = vmatmul.mubr.msk.f32.gmra.mxu0 %vm164_vm1, %v150_v7 }
  0x18   : > { %368 = vst.msk [vmem:[%s4303_s20 + $0x30] sm:$0xff] %vm164_vm1, %v153_v13  ;;  %376 = vst.msk [vmem:[%s4303_s20 + $0x70] sm:$0xff] %vm164_vm1, %v161_v14  ;;  %v162_v16 = vld [vmem:[%s4298_s17 + $0x78] sm:$0xff]  ;;  %4099 = vmatmul.mubr.msk.f32.gmra.mxu1 %vm164_vm1, %v158_v8  ;;  %4089 = vmatprep.mubr.msk.f32.mxu0 %vm164_vm1, %v151_v9 }
  0x19   : > { %369 = vst.msk [vmem:[%s4303_s20 + $0x38] sm:$0xff] %vm164_vm1, %v154_v15  ;;  %377 = vst.msk [vmem:[%s4303_s20 + $0x78] sm:$0xff] %vm164_vm1, %v162_v16  ;;  %4101 = vmatprep.mubr.msk.f32.mxu1 %vm164_vm1, %v159_v10 }
  0x1b   : > { %4090 = vmatmul.mubr.msk.f32.gmra.mxu0 %vm164_vm1, %v152_v11 }
  0x1c   : > { %4102 = vmatmul.mubr.msk.f32.gmra.mxu1 %vm164_vm1, %v160_v12  ;;  %4092 = vmatprep.mubr.msk.f32.mxu0 %vm164_vm1, %v153_v13 }
  0x1d   : > { %4104 = vmatprep.mubr.msk.f32.mxu1 %vm164_vm1, %v161_v14 }
  0x1f   : > { %4093 = vmatmul.mubr.msk.f32.gmra.mxu0 %vm164_vm1, %v154_v15 }
  0x20   : > { %4105 = vmatmul.mubr.msk.f32.gmra.mxu1 %vm164_vm1, %v162_v16 }
  0xd3   : > { %v4369_v17 = vpop.f32.mrf.mxu0 }
  0xd4   : > { %v4371_v18 = vpop.f32.mrf.mxu1  ;;  %v481_v19 = vand.u32 2147483647, %v4369_v17  ;;  %v484_v20 = vand.u32 2139095040, %v4369_v17 }
  0xd5   : > { %v1305_v21 = vand.u32 2147483647, %v4371_v18  ;;  %v1308_v22 = vand.u32 2139095040, %v4371_v18  ;;  %v4377_v23 = vpop.f32.mrf.mxu0 }
  0xd6   : > { %v485_v24 = vshrl.u32 %v484_v20, 23  ;;  %v488_v25 = vand.u32 8388607, %v481_v19  ;;  %v381_v28 = vand.u32 2139095040, %v4377_v23  ;;  %v378_v30 = vand.u32 2147483647, %v4377_v23  ;;  %v4385_v34 = vpop.f32.mrf.mxu1 }
  0xd7   : > { %v1309_v26 = vshrl.u32 %v1308_v22, 23  ;;  %v1312_v27 = vand.u32 8388607, %v1305_v21  ;;  %6225 = vst [vmem:[#allocation2_spill] sm:$0xff] %v4385_v34  ;;  %v1205_v40 = vand.u32 2139095040, %v4385_v34 }
  0xd8   : > { %v3938_v29 = vadd.s32 4294967169, %v485_v24  ;;  %v489_v31 = vor.u32 8388608, %v488_v25  ;;  %v382_v33 = vshrl.u32 %v381_v28, 23  ;;  %v4389_v39 = vand.u32 8388607, %v378_v30 }
  0xd9   : > { %v3970_v32 = vadd.s32 4294967169, %v1309_v26  ;;  %v1313_v36 = vor.u32 8388608, %v1312_v27  ;;  %v4405_v56 = vshrl.u32 %v1205_v40, 23 }
  0xda   : > { %v491_v35 = vadd.s32 1, %v3938_v29  ;;  %v3934_v38 = vadd.s32 4294967169, %v382_v33  ;;  %v4392_v42 = vshll.u32 %v489_v31, 8  ;;  %v386_v49 = vor.u32 8388608, %v4389_v39 }
  0xdb   : > { %v1315_v37 = vadd.s32 1, %v3970_v32  ;;  %v4394_v46 = vshll.u32 %v1313_v36, 8 }
  0xdc   : > { %vm492_vm2 = vcmp.gt.s32.totalorder %v491_v35, 0  ;;  %v4401_v50 = vadd.s32 1, %v3934_v38 }
  0xdd   : > { %v493_v41 = vsel %vm492_vm2, %v491_v35, 0  ;;  %vm1316_vm3 = vcmp.gt.s32.totalorder %v1315_v37, 0 }
  0xde   : > { %v494_v43 = vshrl.u32 %v493_v41, 5  ;;  %v495_v44 = vand.u32 31, %v493_v41  ;;  %v1317_v45 = vsel %vm1316_vm3, %v1315_v37, 0  ;;  %vm389_vm8 = vcmp.gt.s32.totalorder %v4401_v50, 0 }
  0xdf   : > { %v4396_v47 = vshrl.u32 %v1317_v45, 5  ;;  %v4398_v48 = vand.u32 31, %v1317_v45 }
  0xe0   : > { %v496_v51 = vsub.s32 32, %v495_v44  ;;  %v498_v53 = vshll.u32 %v6167_v52, %v495_v44  ;;  %v501_v55 = vshll.u32 %v6165_v54, %v495_v44  ;;  %v504_v58 = vshll.u32 %v6169_v57, %v495_v44 }
  0xe1   : > { %v507_v60 = vshll.u32 %v6173_v59, %v495_v44  ;;  %v510_v62 = vshll.u32 %v6175_v61, %v495_v44  ;;  %vm513_vm4 = vcmp.lt.s32.totalorder %v494_v43, 1  ;;  %vm514_vm5 = vcmp.lt.s32.totalorder %v494_v43, 2 }
  0xe2   : > { %v499_v63 = vshrl.u32 %v6165_v54, %v496_v51  ;;  %v502_v0 = vshrl.u32 %v6169_v57, %v496_v51  ;;  %v505_v1 = vshrl.u32 %v6173_v59, %v496_v51  ;;  %v497_v2 = vshrl.u32 %v6167_v52, %v496_v51 }
  0xe3   : > { %v508_v3 = vshrl.u32 %v6175_v61, %v496_v51  ;;  %v511_v5 = vshrl.u32 %v6161_v4, %v496_v51  ;;  %vm515_vm6 = vcmp.lt.s32.totalorder %v494_v43, 3  ;;  %v1320_v9 = vsub.s32 32, %v4398_v48 }
  0xe4   : > { %v500_v6 = vor.u32 %v499_v63, %v498_v53  ;;  %v503_v7 = vor.u32 %v502_v0, %v501_v55  ;;  %v506_v8 = vor.u32 %v505_v1, %v504_v58  ;;  %vm516_vm7 = vcmp.lt.s32.totalorder %v494_v43, 4 }
  0xe5   : > { %v509_v10 = vor.u32 %v508_v3, %v507_v60  ;;  %v512_v11 = vor.u32 %v511_v5, %v510_v62  ;;  %v1322_v12 = vshll.u32 %v6167_v52, %v4398_v48  ;;  %v1325_v25 = vshll.u32 %v6165_v54, %v4398_v48 }
  0xe6   : > { %v517_v13 = vsel %vm513_vm4, %v497_v2, %v500_v6  ;;  %v518_v14 = vsel %vm516_vm7, %v506_v8, 2102212464  ;;  %v521_v15 = vsel %vm513_vm4, %v500_v6, %v503_v7  ;;  %v525_v16 = vsel %vm513_vm4, %v503_v7, %v506_v8 }
  0xe7   : > { %v519_v20 = vsel %vm515_vm6, %v503_v7, %v518_v14  ;;  %v522_v22 = vsel %vm516_vm7, %v509_v10, 920167782  ;;  %v526_v24 = vsel %vm516_vm7, %v512_v11, 1326507024  ;;  %v1321_v28 = vshrl.u32 %v6167_v52, %v1320_v9 }
  0xe8   : > { %v523_v26 = vsel %vm515_vm6, %v506_v8, %v522_v22  ;;  %v527_v27 = vsel %vm515_vm6, %v509_v10, %v526_v24  ;;  %v1323_v29 = vshrl.u32 %v6165_v54, %v1320_v9  ;;  %v520_v31 = vsel %vm514_vm5, %v517_v13, %v519_v20 }
  0xe9   : > { %v524_v32 = vsel %vm514_vm5, %v521_v15, %v523_v26  ;;  %v528_v33 = vsel %vm514_vm5, %v525_v16, %v527_v27  ;;  %v1326_v35 = vshrl.u32 %v6169_v57, %v1320_v9  ;;  %v1328_v45 = vshll.u32 %v6169_v57, %v4398_v48 }
  0xea   : > { %v4435_v36 = vmul.u32.u64.low %v4392_v42, %v528_v33  ;;  %v4436_v37 = vmul.u32.u64.high %v4392_v42, %v528_v33, %v4435_v36  ;;  %v4439_v38 = vmul.u32.u64.low %v4392_v42, %v524_v32  ;;  %v4440_v40 = vmul.u32.u64.high %v4392_v42, %v524_v32, %v4439_v38 }
  0xeb   : > { %v1324_v41 = vor.u32 %v1323_v29, %v1322_v12  ;;  %v1327_v44 = vor.u32 %v1326_v35, %v1325_v25  ;;  %v1329_v51 = vshrl.u32 %v6173_v59, %v1320_v9  ;;  %v536_v43 = vmul.u32 %v4392_v42, %v520_v31 }
  0xec   : > { %v1331_v53 = vshll.u32 %v6173_v59, %v4398_v48  ;;  %v1332_v55 = vshrl.u32 %v6175_v61, %v1320_v9  ;;  %v1335_v58 = vshrl.u32 %v6161_v4, %v1320_v9  ;;  %v1334_v62 = vshll.u32 %v6175_v61, %v4398_v48 }
  0xed   : > { %v1330_v60 = vor.u32 %v1329_v51, %v1328_v45  ;;  %vm1337_vm9 = vcmp.lt.s32.totalorder %v4396_v47, 1  ;;  %vm1338_vm10 = vcmp.lt.s32.totalorder %v4396_v47, 2  ;;  %vm538_vm11 = vc.u32 %v4436_v37, %v4439_v38 }
  0xee   : > { %v539_v42 = vadd.s32 1, %v4440_v40  ;;  %v1333_v63 = vor.u32 %v1332_v55, %v1331_v53  ;;  %vm1339_vm12 = vcmp.lt.s32.totalorder %v4396_v47, 3  ;;  %v1336_v0 = vor.u32 %v1335_v58, %v1334_v62 }
  0xef   : > { %vm1340_vm13 = vcmp.lt.s32.totalorder %v4396_v47, 4  ;;  %v1341_v1 = vsel %vm1337_vm9, %v1321_v28, %v1324_v41  ;;  %v1345_v2 = vsel %vm1337_vm9, %v1324_v41, %v1327_v44  ;;  %v1349_v6 = vsel %vm1337_vm9, %v1327_v44, %v1330_v60 }
  0xf0   : > { %v540_v3 = vsel %vm538_vm11, %v539_v42, %v4440_v40  ;;  %v1342_v48 = vsel %vm1340_vm13, %v1330_v60, 2102212464  ;;  %v1346_v5 = vsel %vm1340_vm13, %v1333_v63, 920167782  ;;  %v1350_v10 = vsel %vm1340_vm13, %v1336_v0, 1326507024 }
  0xf1   : > { %v541_v7 = vadd.s32 %v540_v3, %v536_v43  ;;  %v1343_v8 = vsel %vm1339_vm12, %v1327_v44, %v1342_v48  ;;  %v1347_v9 = vsel %vm1339_vm12, %v1330_v60, %v1346_v5  ;;  %v1351_v13 = vsel %vm1339_vm12, %v1333_v63, %v1350_v10 }
  0xf2   : > { %v1344_v11 = vsel %vm1338_vm10, %v1341_v1, %v1343_v8  ;;  %v1348_v12 = vsel %vm1338_vm10, %v1345_v2, %v1347_v9  ;;  %v390_v14 = vsel %vm389_vm8, %v4401_v50, 0  ;;  %v1352_v16 = vsel %vm1338_vm10, %v1349_v6, %v1351_v13 }
  0xf3   : > { %v542_v15 = vadd.s32 536870912, %v541_v7  ;;  %v4471_v20 = vmul.u32.u64.low %v4394_v46, %v1348_v12  ;;  %v4472_v22 = vmul.u32.u64.high %v4394_v46, %v1348_v12, %v4471_v20  ;;  %v4479_v26 = vshrl.u32 %v390_v14, 5 }
  0xf4   : > { %v4476_v24 = vmul.u32.u64.low %v4394_v46, %v1352_v16  ;;  %v4477_v25 = vmul.u32.u64.high %v4394_v46, %v1352_v16, %v4476_v24  ;;  %v392_v28 = vand.u32 31, %v390_v14  ;;  %v1360_v50 = vmul.u32 %v4394_v46, %v1344_v11 }
  0xf5   : > { %v4481_v27 = vshrl.u32 %v542_v15, 30  ;;  %v4486_v47 = vshll.u32 %v386_v49, 8  ;;  %v1202_v29 = vand.u32 2147483647, %v4385_v34  ;;  %v3966_v31 = vadd.s32 4294967169, %v4405_v56 }
  0xf6   : > { %v1363_v33 = vadd.s32 1, %v4472_v22  ;;  %v393_v35 = vsub.s32 32, %v392_v28  ;;  %vm410_vm14 = vcmp.lt.s32.totalorder %v4479_v26, 1  ;;  %vm1362_vm15 = vc.u32 %v4477_v25, %v4471_v20 }
  0xf7   : > { %v544_v32 = vshll.u32 %v4481_v27, 30  ;;  %v395_v46 = vshll.u32 %v6167_v52, %v392_v28  ;;  %v398_v39 = vshll.u32 %v6165_v54, %v392_v28  ;;  %vm411_vm0 = vcmp.lt.s32.totalorder %v4479_v26, 2 }
  0xf8   : > { %vm412_vm1 = vcmp.lt.s32.totalorder %v4479_v26, 3  ;;  %v1364_v56 = vsel %vm1362_vm15, %v1363_v33, %v4472_v22  ;;  %v396_v36 = vshrl.u32 %v6165_v54, %v393_v35  ;;  %v401_v40 = vshll.u32 %v6169_v57, %v392_v28 }
  0xf9   : > { %v4499_v49 = vsub.s32 %v541_v7, %v544_v32  ;;  %v1365_v41 = vadd.s32 %v1364_v56, %v1360_v50  ;;  %v399_v44 = vshrl.u32 %v6169_v57, %v393_v35  ;;  %v402_v45 = vshrl.u32 %v6173_v59, %v393_v35 }
  0xfa   : > { %v404_v51 = vshll.u32 %v6173_v59, %v392_v28  ;;  %v397_v53 = vor.u32 %v396_v36, %v395_v46  ;;  %v405_v55 = vshrl.u32 %v6175_v61, %v393_v35  ;;  %v407_v58 = vshll.u32 %v6175_v61, %v392_v28 }
  0xfb   : > { %v547_v43 = vsub.s32 0, %v4499_v49  ;;  %v1366_v60 = vadd.s32 536870912, %v1365_v41  ;;  %v400_v62 = vor.u32 %v399_v44, %v398_v39  ;;  %v403_v42 = vor.u32 %v402_v45, %v401_v40 }
  0xfc   : > { %v408_v63 = vshrl.u32 %v6161_v4, %v393_v35  ;;  %v394_v1 = vshrl.u32 %v6167_v52, %v393_v35  ;;  %v406_v2 = vor.u32 %v405_v55, %v404_v51  ;;  %vm413_vm2 = vcmp.lt.s32.totalorder %v4479_v26, 4 }
  0xfd   : > { %v3939_v0 = vmin.u32 %v547_v43, %v4499_v49  ;;  %v4514_v3 = vshrl.u32 %v1366_v60, 30  ;;  %v415_v5 = vsel %vm413_vm2, %v403_v42, 2102212464  ;;  %v418_v6 = vsel %vm410_vm14, %v397_v53, %v400_v62 }
  0xfe   : > { %v409_v48 = vor.u32 %v408_v63, %v407_v58  ;;  %v419_v8 = vsel %vm413_vm2, %v406_v2, 920167782  ;;  %v422_v9 = vsel %vm410_vm14, %v400_v62, %v403_v42  ;;  %v1212_v10 = vadd.s32 1, %v3966_v31 }
  0xff   : > { %v549_v7 = vclz %v3939_v0  ;;  %v1368_v11 = vshll.u32 %v4514_v3, 30  ;;  %v414_v12 = vsel %vm410_vm14, %v394_v1, %v397_v53  ;;  %v420_v13 = vsel %vm412_vm1, %v403_v42, %v419_v8 }
 0x100   : > { %v423_v14 = vsel %vm413_vm2, %v409_v48, 1326507024  ;;  %v416_v16 = vsel %vm412_vm1, %v400_v62, %v415_v5  ;;  %v421_v22 = vsel %vm411_vm0, %v418_v6, %v420_v13  ;;  %vm1213_vm4 = vcmp.gt.s32.totalorder %v1212_v10, 0 }
 0x101   : > { %v3940_v15 = vadd.s32 4294967294, %v549_v7  ;;  %v424_v24 = vsel %vm412_vm1, %v406_v2, %v423_v14  ;;  %v4531_v28 = vsub.s32 %v1365_v41, %v1368_v11  ;;  %v417_v56 = vsel %vm411_vm0, %v414_v12, %v416_v16 }
 0x102   : > { %v425_v50 = vsel %vm411_vm0, %v422_v9, %v424_v24  ;;  %v4536_v31 = vmul.u32.u64.low %v4486_v47, %v421_v22  ;;  %v4537_v32 = vmul.u32.u64.high %v4486_v47, %v421_v22, %v4536_v31  ;;  %v1214_v36 = vsel %vm1213_vm4, %v1212_v10, 0 }
 0x103   : > { %vm3941_vm3 = vcmp.lt.s32.totalorder %v3940_v15, 0  ;;  %v4541_v33 = vmul.u32.u64.low %v4486_v47, %v425_v50  ;;  %v4542_v35 = vmul.u32.u64.high %v4486_v47, %v425_v50, %v4541_v33  ;;  %v1371_v39 = vsub.s32 0, %v4531_v28 }
 0x104   : > { %v552_v46 = vsel %vm3941_vm3, 0, %v3940_v15  ;;  %v537_v40 = vadd.s32 %v4439_v38, %v4436_v37  ;;  %v436_v51 = vadd.s32 1, %v4537_v32  ;;  %v1216_v43 = vand.u32 31, %v1214_v36 }
 0x105   : > { %v553_v41 = vsub.s32 32, %v552_v46  ;;  %v557_v44 = vsub.s32 4294967266, %v552_v46  ;;  %v3971_v45 = vmin.u32 %v1371_v39, %v4531_v28  ;;  %v433_v58 = vmul.u32 %v4486_v47, %v417_v56 }
 0x106   : > { %vm435_vm5 = vc.u32 %v4542_v35, %v4536_v31  ;;  %v1209_v37 = vand.u32 8388607, %v1202_v29  ;;  %v554_v38 = vshll.u32 %v4499_v49, %v552_v46  ;;  %v1217_v63 = vsub.s32 32, %v1216_v43 }
 0x107   : > { %v555_v53 = vshrl.u32 %v537_v40, %v553_v41  ;;  %v558_v55 = vadd.s32 127, %v557_v44  ;;  %v1373_v26 = vclz %v3971_v45  ;;  %v437_v60 = vsel %vm435_vm5, %v436_v51, %v4537_v32  ;;  %v4577_v44 = vpop.f32.mrf.mxu0 }
 0x108   : > { %v438_v42 = vadd.s32 %v437_v60, %v433_v58  ;;  %v1361_v47 = vadd.s32 %v4471_v20, %v4477_v25  ;;  %v1210_v5 = vor.u32 8388608, %v1209_v37  ;;  %v4560_v6 = vshrl.u32 %v1214_v36, 5  ;;  %6226 = vst [vmem:[#allocation3_spill] sm:$0xff] %v4577_v44 }
 0x109   : > { %v559_v62 = vshll.u32 %v558_v55, 23  ;;  %v3972_v0 = vadd.s32 4294967294, %v1373_v26  ;;  %v556_v1 = vor.u32 %v555_v53, %v554_v38  ;;  %v1220_v49 = vshrl.u32 %v6165_v54, %v1217_v63 }
 0x10a   : > { %v439_v48 = vadd.s32 536870912, %v438_v42  ;;  %v1219_v12 = vshll.u32 %v6167_v52, %v1216_v43  ;;  %v1223_v13 = vshrl.u32 %v6169_v57, %v1217_v63  ;;  %v1226_v20 = vshrl.u32 %v6173_v59, %v1217_v63 }
 0x10b   : > { %v560_v2 = vor.u32 4788187, %v559_v62  ;;  %vm3973_vm6 = vcmp.lt.s32.totalorder %v3972_v0, 0  ;;  %v563_v14 = vcvt.s32.f32 %v556_v1  ;;  %v1229_v25 = vshrl.u32 %v6175_v61, %v1217_v63 }
 0x10c   : > { %v1376_v8 = vsel %vm3973_vm6, 0, %v3972_v0  ;;  %v4562_v9 = vshrl.u32 %v439_v48, 30  ;;  %v1222_v22 = vshll.u32 %v6165_v54, %v1216_v43  ;;  %v1225_v24 = vshll.u32 %v6169_v57, %v1216_v43 }
 0x10d   : > { %v561_v7 = vand.u32 2147483647, %v560_v2  ;;  %v1377_v10 = vsub.s32 32, %v1376_v8  ;;  %v1381_v11 = vsub.s32 4294967266, %v1376_v8  ;;  %v1232_v50 = vshrl.u32 %v6161_v4, %v1217_v63 }
 0x10e   : > { %v441_v15 = vshll.u32 %v4562_v9, 30  ;;  %v1221_v46 = vor.u32 %v1220_v49, %v1219_v12  ;;  %v1228_v39 = vshll.u32 %v6173_v59, %v1216_v43  ;;  %v1224_v40 = vor.u32 %v1223_v13, %v1222_v22 }
 0x10f   : > { %v1382_v16 = vadd.s32 127, %v1381_v11  ;;  %v564_v32 = vmul.f32 %v563_v14, %v561_v7  ;;  %v1379_v56 = vshrl.u32 %v1361_v47, %v1377_v10  ;;  %v1231_v41 = vshll.u32 %v6175_v61, %v1216_v43 }
 0x110   : > { %v4573_v33 = vsub.s32 %v438_v42, %v441_v15  ;;  %v1227_v51 = vor.u32 %v1226_v20, %v1225_v24  ;;  %v1230_v53 = vor.u32 %v1229_v25, %v1228_v39  ;;  %v687_v55 = vand.u32 2147483647, %v4577_v44 }
 0x111   : > { %v1383_v36 = vshll.u32 %v1382_v16, 23  ;;  %v1378_v58 = vshll.u32 %v4531_v28, %v1376_v8  ;;  %v1218_v26 = vshrl.u32 %v6167_v52, %v1217_v63  ;;  %v1233_v60 = vor.u32 %v1232_v50, %v1231_v41 }
 0x112   : > { %v444_v45 = vsub.s32 0, %v4573_v33  ;;  %v1250_v37 = vshll.u32 %v1210_v5, 8  ;;  %v565_v38 = vxor.u32 2147483648, %v564_v32  ;;  %vm1234_vm7 = vcmp.lt.s32.totalorder %v4560_v6, 1 }
 0x113   : > { %v1384_v62 = vor.u32 4788187, %v1383_v36  ;;  %v1380_v43 = vor.u32 %v1379_v56, %v1378_v58  ;;  %vm1236_vm8 = vcmp.lt.s32.totalorder %v4560_v6, 3  ;;  %vm1237_vm9 = vcmp.lt.s32.totalorder %v4560_v6, 4 }
 0x114   : > { %v3935_v42 = vmin.u32 %v444_v45, %v4573_v33  ;;  %v1242_v0 = vsel %vm1234_vm7, %v1221_v46, %v1224_v40  ;;  %v1239_v2 = vsel %vm1237_vm9, %v1227_v51, 2102212464  ;;  %v1243_v48 = vsel %vm1237_vm9, %v1230_v53, 920167782 }
 0x115   : > { %v1246_v28 = vsel %vm1234_vm7, %v1224_v40, %v1227_v51  ;;  %vm1235_vm10 = vcmp.lt.s32.totalorder %v4560_v6, 2  ;;  %v1238_v63 = vsel %vm1234_vm7, %v1218_v26, %v1221_v46  ;;  %v1244_v47 = vsel %vm1236_vm8, %v1227_v51, %v1243_v48 }
 0x116   : > { %v446_v1 = vclz %v3935_v42  ;;  %v1247_v5 = vsel %vm1237_vm9, %v1233_v60, 1326507024  ;;  %v1385_v7 = vand.u32 2147483647, %v1384_v62  ;;  %v1245_v49 = vsel %vm1235_vm10, %v1242_v0, %v1244_v47  ;;  %v4620_v60 = vpop.f32.mrf.mxu1 }
 0x117   : > { %v1248_v10 = vsel %vm1236_vm8, %v1230_v53, %v1247_v5  ;;  %v1240_v11 = vsel %vm1236_vm8, %v1224_v40, %v1239_v2  ;;  %v4592_v13 = vmul.u32.u64.low %v1250_v37, %v1245_v49  ;;  %v4593_v14 = vmul.u32.u64.high %v1250_v37, %v1245_v49, %v4592_v13  ;;  %6229 = vst [vmem:[#allocation4_spill] sm:$0xff] %v4620_v60 }
 0x118   : > { %v3936_v8 = vadd.s32 4294967294, %v446_v1  ;;  %v1249_v12 = vsel %vm1235_vm10, %v1246_v28, %v1248_v10  ;;  %v690_v25 = vand.u32 2139095040, %v4577_v44  ;;  %v1387_v16 = vcvt.s32.f32 %v1380_v43 }
 0x119   : > { %v4596_v15 = vmul.u32.u64.low %v1250_v37, %v1249_v12  ;;  %v4597_v20 = vmul.u32.u64.high %v1250_v37, %v1249_v12, %v4596_v15  ;;  %v1241_v24 = vsel %vm1235_vm10, %v1238_v63, %v1240_v11  ;;  %vm6199_vm12 = vcmp.lt.s32.totalorder %v4369_v17, 0 }
 0x11a   : > { %vm3937_vm11 = vcmp.lt.s32.totalorder %v3936_v8, 0  ;;  %v1260_v50 = vadd.s32 1, %v4593_v14  ;;  %v691_v46 = vshrl.u32 %v690_v25, 23  ;;  %v566_v39 = vsel %vm6199_vm12, %v565_v38, %v564_v32 }
 0x11b   : > { %v449_v22 = vsel %vm3937_vm11, 0, %v3936_v8  ;;  %v1388_v56 = vmul.f32 %v1387_v16, %v1385_v7  ;;  %v694_v36 = vand.u32 8388607, %v687_v55  ;;  %v1257_v41 = vmul.u32 %v1250_v37, %v1241_v24 }
 0x11c   : > { %v454_v40 = vsub.s32 4294967266, %v449_v22  ;;  %vm1259_vm13 = vc.u32 %v4597_v20, %v4592_v13  ;;  %v3946_v45 = vadd.s32 4294967169, %v691_v46  ;;  %vm4612_vm14 = vcmp.le.f32.partialorder %v481_v19, 0.7853982 }
 0x11d   : > { %v1261_v51 = vsel %vm1259_vm13, %v1260_v50, %v4593_v14  ;;  %v569_v32 = vsel %vm4612_vm14, %v4369_v17, %v566_v39  ;;  %v450_v53 = vsub.s32 32, %v449_v22  ;;  %vm6200_vm15 = vcmp.lt.s32.totalorder %v4371_v18, 0 }
 0x11e   : > { %v1262_v58 = vadd.s32 %v1261_v51, %v1257_v41  ;;  %v697_v26 = vadd.s32 1, %v3946_v45  ;;  %v1389_v37 = vxor.u32 2147483648, %v1388_v56  ;;  %v695_v38 = vor.u32 8388608, %v694_v36 }
 0x11f   : > { %v434_v19 = vadd.s32 %v4536_v31, %v4542_v35  ;;  %v455_v62 = vadd.s32 127, %v454_v40  ;;  %4189 = vcosq.f32 %v569_v32  ;;  %v464_v43 = vsub.s32 4, %v4562_v9 }
 0x120   : > { %v1263_v42 = vadd.s32 536870912, %v1262_v58  ;;  %vm698_vm0 = vcmp.gt.s32.totalorder %v697_v26, 0  ;;  %v1514_v1 = vand.u32 2139095040, %v4620_v60  ;;  %4191 = vsinq.f32 %v569_v32 }
 0x121   : > { %v699_v0 = vsel %vm698_vm0, %v697_v26, 0  ;;  %v452_v2 = vshrl.u32 %v434_v19, %v450_v53  ;;  %v4631_v63 = vsel %vm6200_vm15, %v1389_v37, %v1388_v56  ;;  %v451_v31 = vshll.u32 %v4573_v33, %v449_v22 }
 0x122   : > { %v4627_v48 = vshrl.u32 %v1263_v42, 30  ;;  %v701_v28 = vand.u32 31, %v699_v0  ;;  %v4634_v35 = vshll.u32 %v695_v38, 8  ;;  %v6160_v47 = vand.u32 2147483647, %v4620_v60 }
 0x123   : > { %v456_v5 = vshll.u32 %v455_v62, 23  ;;  %v1515_v14 = vshrl.u32 %v1514_v1, 23  ;;  %v453_v15 = vor.u32 %v452_v2, %v451_v31  ;;  %v700_v33 = vshrl.u32 %v699_v0, 5 }
 0x124   : > { %v1265_v7 = vshll.u32 %v4627_v48, 30  ;;  %v702_v8 = vsub.s32 32, %v701_v28  ;;  %v704_v49 = vshll.u32 %v6167_v52, %v701_v28  ;;  %v707_v10 = vshll.u32 %v6165_v54, %v701_v28 }
 0x125   : > { %v710_v11 = vshll.u32 %v6169_v57, %v701_v28  ;;  %v713_v12 = vshll.u32 %v6173_v59, %v701_v28  ;;  %v1518_v46 = vand.u32 8388607, %v6160_v47  ;;  %v457_v39 = vor.u32 4788187, %v456_v5 }
 0x126   : > { %v4642_v25 = vsub.s32 %v1262_v58, %v1265_v7  ;;  %v705_v16 = vshrl.u32 %v6165_v54, %v702_v8  ;;  %v708_v22 = vshrl.u32 %v6169_v57, %v702_v8  ;;  %v711_v24 = vshrl.u32 %v6173_v59, %v702_v8 }
 0x127   : > { %v714_v50 = vshrl.u32 %v6175_v61, %v702_v8  ;;  %v716_v40 = vshll.u32 %v6175_v61, %v701_v28  ;;  %v3978_v32 = vadd.s32 4294967169, %v1515_v14  ;;  %vm4654_vm1 = vcmp.le.f32.partialorder %v1305_v21, 0.7853982 }
 0x128   : > { %v1268_v56 = vsub.s32 0, %v4642_v25  ;;  %v706_v36 = vor.u32 %v705_v16, %v704_v49  ;;  %v709_v41 = vor.u32 %v708_v22, %v707_v10  ;;  %v712_v45 = vor.u32 %v711_v24, %v710_v11  ;;  %v4669_v16 = vpop.f32.mrf.mxu0 }
 0x129   : > { %v715_v51 = vor.u32 %v714_v50, %v713_v12  ;;  %v703_v26 = vshrl.u32 %v6167_v52, %v702_v8  ;;  %v717_v37 = vshrl.u32 %v6161_v4, %v702_v8  ;;  %vm719_vm2 = vcmp.lt.s32.totalorder %v700_v33, 1  ;;  %6232 = vst [vmem:[#allocation5_spill] sm:$0xff] %v4669_v16 }
 0x12a   : > { %v3967_v58 = vmin.u32 %v1268_v56, %v4642_v25  ;;  %vm720_vm3 = vcmp.lt.s32.totalorder %v700_v33, 2  ;;  %vm721_vm4 = vcmp.lt.s32.totalorder %v700_v33, 3  ;;  %vm722_vm5 = vcmp.lt.s32.totalorder %v700_v33, 4 }
 0x12b   : > { %v1519_v38 = vor.u32 8388608, %v1518_v46  ;;  %v718_v62 = vor.u32 %v717_v37, %v716_v40  ;;  %v724_v42 = vsel %vm722_vm5, %v712_v45, 2102212464  ;;  %v727_v0 = vsel %vm719_vm2, %v706_v36, %v709_v41 }
 0x12c   : > { %v1270_v19 = vclz %v3967_v58  ;;  %v458_v1 = vand.u32 2147483647, %v457_v39  ;;  %v728_v21 = vsel %vm722_vm5, %v715_v51, 920167782  ;;  %v731_v2 = vsel %vm719_vm2, %v709_v41, %v712_v45  ;;  %v4661_v31 = vpop.eup %4189 }
 0x12d   : > { %v1521_v28 = vadd.s32 1, %v3978_v32  ;;  %v723_v7 = vsel %vm719_vm2, %v703_v26, %v706_v36  ;;  %v729_v49 = vsel %vm721_vm4, %v712_v45, %v728_v21  ;;  %v732_v8 = vsel %vm722_vm5, %v718_v62, 1326507024  ;;  %v4664_v10 = vpop.eup %4191 }
 0x12e   : > { %v3968_v5 = vadd.s32 4294967294, %v1270_v19  ;;  %v725_v11 = vsel %vm721_vm4, %v709_v41, %v724_v42  ;;  %v730_v12 = vsel %vm720_vm3, %v727_v0, %v729_v49  ;;  %v733_v14 = vsel %vm721_vm4, %v715_v51, %v732_v8 }
 0x12f   : > { %vm1522_vm6 = vcmp.gt.s32.totalorder %v1521_v28, 0  ;;  %v734_v22 = vsel %vm720_vm3, %v731_v2, %v733_v14  ;;  %v4673_v24 = vmul.u32.u64.low %v4634_v35, %v730_v12  ;;  %v4674_v50 = vmul.u32.u64.high %v4634_v35, %v730_v12, %v4673_v24 }
 0x130   : > { %vm3969_vm7 = vcmp.lt.s32.totalorder %v3968_v5, 0  ;;  %v4678_v39 = vmul.u32.u64.low %v4634_v35, %v734_v22  ;;  %v4679_v56 = vmul.u32.u64.high %v4634_v35, %v734_v22, %v4678_v39  ;;  %v1523_v36 = vsel %vm1522_vm6, %v1521_v28, 0 }
 0x131   : > { %v1273_v46 = vsel %vm3969_vm7, 0, %v3968_v5  ;;  %v460_v40 = vcvt.s32.f32 %v453_v15  ;;  %v726_v45 = vsel %vm720_vm3, %v723_v7, %v725_v11  ;;  %v587_v51 = vand.u32 2139095040, %v4669_v16 }
 0x132   : > { %v1278_v41 = vsub.s32 4294967266, %v1273_v46  ;;  %v4687_v32 = vsel %vm4654_vm1, %v4371_v18, %v4631_v63  ;;  %v1258_v58 = vadd.s32 %v4592_v13, %v4597_v20  ;;  %v1525_v26 = vand.u32 31, %v1523_v36 }
 0x133   : > { %v6159_v37 = vand.u32 2147483647, %v4669_v16  ;;  %v461_v19 = vmul.f32 %v460_v40, %v458_v1  ;;  %v745_v15 = vadd.s32 1, %v4674_v50  ;;  %v4693_v33 = vshll.u32 %v1519_v38, 8 }
 0x134   : > { %v1279_v62 = vadd.s32 127, %v1278_v41  ;;  %vm380_vm8 = vcmp.lt.s32.totalorder %v4377_v23, 0  ;;  %v742_v42 = vmul.u32 %v4634_v35, %v726_v45  ;;  %vm744_vm9 = vc.u32 %v4679_v56, %v4673_v24 }
 0x135   : > { %v1526_v63 = vsub.s32 32, %v1525_v26  ;;  %v1528_v0 = vshll.u32 %v6167_v52, %v1525_v26  ;;  %v1274_v13 = vsub.s32 32, %v1273_v46  ;;  %v746_v20 = vsel %vm744_vm9, %v745_v15, %v4674_v50 }
 0x136   : > { %v1531_v1 = vshll.u32 %v6165_v54, %v1525_v26  ;;  %v588_v21 = vshrl.u32 %v587_v51, 23  ;;  %v747_v2 = vadd.s32 %v746_v20, %v742_v42  ;;  %v1524_v28 = vshrl.u32 %v1523_v36, 5 }
 0x137   : > { %v1529_v38 = vshrl.u32 %v6165_v54, %v1526_v63  ;;  %v1532_v5 = vshrl.u32 %v6169_v57, %v1526_v63  ;;  %v462_v7 = vxor.u32 2147483648, %v461_v19  ;;  %v1280_v35 = vshll.u32 %v1279_v62, 23 }
 0x138   : > { %v1534_v49 = vshll.u32 %v6169_v57, %v1525_v26  ;;  %v1535_v8 = vshrl.u32 %v6173_v59, %v1526_v63  ;;  %vm4708_vm10 = vcmp.le.f32.partialorder %v378_v30, 0.7853982  ;;  %v1275_v12 = vshll.u32 %v4642_v25, %v1273_v46 }
 0x139   : > { %v748_v14 = vadd.s32 536870912, %v747_v2  ;;  %v1530_v22 = vor.u32 %v1529_v38, %v1528_v0  ;;  %v1537_v50 = vshll.u32 %v6173_v59, %v1525_v26  ;;  %v1533_v39 = vor.u32 %v1532_v5, %v1531_v1 }
 0x13a   : > { %v1536_v36 = vor.u32 %v1535_v8, %v1534_v49  ;;  %v1538_v40 = vshrl.u32 %v6175_v61, %v1526_v63  ;;  %v1540_v41 = vshll.u32 %v6175_v61, %v1525_v26  ;;  %v1276_v45 = vshrl.u32 %v1258_v58, %v1274_v13 }
 0x13b   : > { %v4716_v51 = vshrl.u32 %v748_v14, 30  ;;  %v1541_v30 = vshrl.u32 %v6161_v4, %v1526_v63  ;;  %vm1543_vm11 = vcmp.lt.s32.totalorder %v1524_v28, 1  ;;  %v1281_v62 = vor.u32 4788187, %v1280_v35 }
 0x13c   : > { %v1539_v15 = vor.u32 %v1538_v40, %v1537_v50  ;;  %vm1545_vm13 = vcmp.lt.s32.totalorder %v1524_v28, 3  ;;  %vm1546_vm0 = vcmp.lt.s32.totalorder %v1524_v28, 4  ;;  %v1527_v46 = vshrl.u32 %v6167_v52, %v1526_v63 }
 0x13d   : > { %v750_v25 = vshll.u32 %v4716_v51, 30  ;;  %v1542_v42 = vor.u32 %v1541_v30, %v1540_v41  ;;  %vm1544_vm2 = vcmp.lt.s32.totalorder %v1524_v28, 2  ;;  %v463_v0 = vsel %vm380_vm8, %v462_v7, %v461_v19 }
 0x13e   : > { %v1548_v58 = vsel %vm1546_vm0, %v1536_v36, 2102212464  ;;  %v1551_v26 = vsel %vm1543_vm11, %v1530_v22, %v1533_v39  ;;  %v1552_v13 = vsel %vm1546_vm0, %v1539_v15, 920167782  ;;  %v1277_v20 = vor.u32 %v1276_v45, %v1275_v12 }
 0x13f   : > { %v4726_v1 = vsub.s32 %v747_v2, %v750_v25  ;;  %v1553_v38 = vsel %vm1545_vm13, %v1536_v36, %v1552_v13  ;;  %v3942_v5 = vadd.s32 4294967169, %v588_v21  ;;  %v1282_v35 = vand.u32 2147483647, %v1281_v62 }
 0x140   : > { %v1554_v63 = vsel %vm1544_vm2, %v1551_v26, %v1553_v38  ;;  %v1555_v49 = vsel %vm1543_vm11, %v1533_v39, %v1536_v36  ;;  %v1556_v8 = vsel %vm1546_vm0, %v1542_v42, 1326507024  ;;  %v1547_v7 = vsel %vm1543_vm11, %v1527_v46, %v1530_v22 }
 0x141   : > { %v753_v19 = vsub.s32 0, %v4726_v1  ;;  %v1549_v14 = vsel %vm1545_vm13, %v1533_v39, %v1548_v58  ;;  %v1557_v12 = vsel %vm1545_vm13, %v1539_v15, %v1556_v8  ;;  %v4739_v2 = vsel %vm4708_vm10, %v4377_v23, %v463_v0  ;;  %v4771_v58 = vpop.f32.mrf.mxu1 }
 0x142   : > { %v1558_v21 = vsel %vm1544_vm2, %v1555_v49, %v1557_v12  ;;  %v4743_v50 = vmul.u32.u64.low %v4693_v33, %v1554_v63  ;;  %v4744_v36 = vmul.u32.u64.high %v4693_v33, %v1554_v63, %v4743_v50  ;;  %v1284_v40 = vcvt.s32.f32 %v1277_v20  ;;  %6235 = vst [vmem:[#allocation6_spill] sm:$0xff] %v4771_v58 }
 0x143   : > { %v3947_v41 = vmin.u32 %v753_v19, %v4726_v1  ;;  %v4749_v22 = vmul.u32.u64.low %v4693_v33, %v1558_v21  ;;  %v4750_v39 = vmul.u32.u64.high %v4693_v33, %v1558_v21, %v4749_v22  ;;  %4193 = vcosq.f32 %v4687_v32 }
 0x144   : > { %v1550_v45 = vsel %vm1544_vm2, %v1547_v7, %v1549_v14  ;;  %v4756_v30 = vand.u32 8388607, %v6159_v37  ;;  %v594_v62 = vadd.s32 1, %v3942_v5  ;;  %4195 = vsinq.f32 %v4687_v32 }
 0x145   : > { %v1285_v15 = vmul.f32 %v1284_v40, %v1282_v35  ;;  %v755_v25 = vclz %v3947_v41  ;;  %v4764_v46 = vsel %vm380_vm8, %v464_v43, %v4562_v9  ;;  %4197 = vcosq.f32 %v4739_v2 }
 0x146   : > { %v1569_v28 = vadd.s32 1, %v4744_v36  ;;  %vm595_vm3 = vcmp.gt.s32.totalorder %v594_v62, 0  ;;  %v1566_v0 = vmul.u32 %v4693_v33, %v1550_v45  ;;  %vm1568_vm4 = vc.u32 %v4750_v39, %v4743_v50 }
 0x147   : > { %v3948_v42 = vadd.s32 4294967294, %v755_v25  ;;  %v596_v32 = vsel %vm595_vm3, %v594_v62, 0  ;;  %vm1204_vm5 = vcmp.lt.s32.totalorder %v4385_v34, 0  ;;  %v592_v9 = vor.u32 8388608, %v4756_v30 }
 0x148   : > { %v1570_v26 = vsel %vm1568_vm4, %v1569_v28, %v4744_v36  ;;  %v598_v43 = vand.u32 31, %v596_v32  ;;  %v6163_v13 = vand.u32 2147483647, %v4771_v58  ;;  %v1286_v20 = vxor.u32 2147483648, %v1285_v15 }
 0x149   : > { %v743_v38 = vadd.s32 %v4673_v24, %v4679_v56  ;;  %vm3949_vm6 = vcmp.lt.s32.totalorder %v3948_v42, 0  ;;  %v1571_v33 = vadd.s32 %v1570_v26, %v1566_v0  ;;  %v1411_v49 = vand.u32 2139095040, %v4771_v58 }
 0x14a   : > { %v758_v5 = vsel %vm3949_vm6, 0, %v3948_v42  ;;  %v599_v35 = vsub.s32 32, %v598_v43  ;;  %v601_v63 = vshll.u32 %v6167_v52, %v598_v43  ;;  %v604_v14 = vshll.u32 %v6165_v54, %v598_v43 }
 0x14b   : > { %v759_v8 = vsub.s32 32, %v758_v5  ;;  %v763_v19 = vsub.s32 4294967266, %v758_v5  ;;  %v1572_v7 = vadd.s32 536870912, %v1571_v33  ;;  %v760_v12 = vshll.u32 %v4726_v1, %v758_v5 }
 0x14c   : > { %v602_v21 = vshrl.u32 %v6165_v54, %v599_v35  ;;  %v605_v36 = vshrl.u32 %v6169_v57, %v599_v35  ;;  %v607_v24 = vshll.u32 %v6169_v57, %v598_v43  ;;  %v608_v22 = vshrl.u32 %v6173_v59, %v599_v35 }
 0x14d   : > { %v761_v56 = vshrl.u32 %v743_v38, %v759_v8  ;;  %v764_v40 = vadd.s32 127, %v763_v19  ;;  %v4786_v41 = vshrl.u32 %v1572_v7, 30  ;;  %v597_v45 = vshrl.u32 %v596_v32, 5 }
 0x14e   : > { %v603_v30 = vor.u32 %v602_v21, %v601_v63  ;;  %v610_v62 = vshll.u32 %v6173_v59, %v598_v43  ;;  %v611_v25 = vshrl.u32 %v6175_v61, %v599_v35  ;;  %v606_v0 = vor.u32 %v605_v36, %v604_v14 }
 0x14f   : > { %v762_v28 = vor.u32 %v761_v56, %v760_v12  ;;  %v765_v1 = vshll.u32 %v764_v40, 23  ;;  %v1574_v42 = vshll.u32 %v4786_v41, 30  ;;  %v609_v26 = vor.u32 %v608_v22, %v607_v24 }
 0x150   : > { %v612_v5 = vor.u32 %v611_v25, %v610_v62  ;;  %v613_v38 = vshll.u32 %v6175_v61, %v598_v43  ;;  %v614_v8 = vshrl.u32 %v6161_v4, %v599_v35  ;;  %v4794_v19 = vpop.eup %4193  ;;  %v1287_v32 = vsel %vm1204_vm5, %v1286_v20, %v1285_v15 }
 0x151   : > { %v766_v63 = vor.u32 4788187, %v765_v1  ;;  %v4798_v7 = vsub.s32 %v1571_v33, %v1574_v42  ;;  %v1412_v21 = vshrl.u32 %v1411_v49, 23  ;;  %v4800_v12 = vpop.eup %4195  ;;  %v600_v56 = vshrl.u32 %v6167_v52, %v599_v35 }
 0x152   : > { %v615_v14 = vor.u32 %v614_v8, %v613_v38  ;;  %vm616_vm7 = vcmp.lt.s32.totalorder %v597_v45, 1  ;;  %vm618_vm8 = vcmp.lt.s32.totalorder %v597_v45, 3  ;;  %v4803_v36 = vpop.eup %4197  ;;  %vm4807_vm9 = vcmp.le.f32.partialorder %v1202_v29, 0.7853982 }
 0x153   : > { %v767_v15 = vand.u32 2147483647, %v766_v63  ;;  %v1577_v20 = vsub.s32 0, %v4798_v7  ;;  %vm619_vm11 = vcmp.lt.s32.totalorder %v597_v45, 4  ;;  %v632_v33 = vshll.u32 %v592_v9, 8 }
 0x154   : > { %v769_v49 = vcvt.s32.f32 %v762_v28  ;;  %v621_v24 = vsel %vm619_vm11, %v609_v26, 2102212464  ;;  %v624_v35 = vsel %vm616_vm7, %v603_v30, %v606_v0  ;;  %v625_v40 = vsel %vm619_vm11, %v612_v5, 920167782 }
 0x155   : > { %v3979_v22 = vmin.u32 %v1577_v20, %v4798_v7  ;;  %vm617_vm13 = vcmp.lt.s32.totalorder %v597_v45, 2  ;;  %v626_v62 = vsel %vm618_vm8, %v609_v26, %v625_v40  ;;  %v628_v29 = vsel %vm616_vm7, %v606_v0, %v609_v26 }
 0x156   : > { %v620_v25 = vsel %vm616_vm7, %v600_v56, %v603_v30  ;;  %v627_v1 = vsel %vm617_vm13, %v624_v35, %v626_v62  ;;  %v629_v42 = vsel %vm619_vm11, %v615_v14, 1326507024  ;;  %v3974_v38 = vadd.s32 4294967169, %v1412_v21  ;;  %v4832_v56 = vpop.f32.mrf.mxu0 }
 0x157   : > { %v770_v8 = vmul.f32 %v769_v49, %v767_v15  ;;  %v1579_v9 = vclz %v3979_v22  ;;  %v622_v28 = vsel %vm618_vm8, %v606_v0, %v621_v24  ;;  %v630_v63 = vsel %vm618_vm8, %v612_v5, %v629_v42  ;;  %6238 = vst [vmem:[#allocation7_spill] sm:$0xff] %v4832_v56 }
 0x158   : > { %v631_v37 = vsel %vm617_vm13, %v628_v29, %v630_v63  ;;  %v4821_v20 = vmul.u32.u64.low %v632_v33, %v627_v1  ;;  %v4822_v47 = vmul.u32.u64.high %v632_v33, %v627_v1, %v4821_v20  ;;  %v1418_v40 = vadd.s32 1, %v3974_v38 }
 0x159   : > { %v3980_v26 = vadd.s32 4294967294, %v1579_v9  ;;  %v4825_v4 = vmul.u32.u64.low %v632_v33, %v631_v37  ;;  %v4826_v30 = vmul.u32.u64.high %v632_v33, %v631_v37, %v4825_v4  ;;  %v4830_v21 = vand.u32 8388607, %v6163_v13 }
 0x15a   : > { %4199 = vsinq.f32 %v4739_v2  ;;  %v1288_v0 = vsub.s32 4, %v4627_v48  ;;  %vm689_vm0 = vcmp.lt.s32.totalorder %v4577_v44, 0  ;;  %vm1419_vm2 = vcmp.gt.s32.totalorder %v1418_v40, 0 }
 0x15b   : > { %v771_v5 = vxor.u32 2147483648, %v770_v8  ;;  %vm3981_vm3 = vcmp.lt.s32.totalorder %v3980_v26, 0  ;;  %v623_v14 = vsel %vm617_vm13, %v620_v25, %v622_v28  ;;  %v1420_v15 = vsel %vm1419_vm2, %v1418_v40, 0 }
 0x15c   : > { %v4841_v4 = vsel %vm4807_vm9, %v4385_v34, %v1287_v32  ;;  %v1582_v37 = vsel %vm3981_vm3, 0, %v3980_v26  ;;  %v642_v49 = vadd.s32 1, %v4822_v47  ;;  %v896_v2 = vand.u32 2139095040, %v4832_v56 }
 0x15d   : > { %v1567_v24 = vadd.s32 %v4743_v50, %v4750_v39  ;;  %v1583_v35 = vsub.s32 32, %v1582_v37  ;;  %v1587_v22 = vsub.s32 4294967266, %v1582_v37  ;;  %v1416_v62 = vor.u32 8388608, %v4830_v21 }
 0x15e   : > { %v639_v45 = vmul.u32 %v632_v33, %v623_v14  ;;  %vm641_vm4 = vc.u32 %v4826_v30, %v4821_v20  ;;  %v4850_v29 = vshrl.u32 %v1420_v15, 5  ;;  %v1422_v32 = vand.u32 31, %v1420_v15 }
 0x15f   : > { %v772_v25 = vsel %vm689_vm0, %v771_v5, %v770_v8  ;;  %v1585_v1 = vshrl.u32 %v1567_v24, %v1583_v35  ;;  %v1588_v42 = vadd.s32 127, %v1587_v22  ;;  %v643_v38 = vsel %vm641_vm4, %v642_v49, %v4822_v47 }
 0x160   : > { %v644_v9 = vadd.s32 %v643_v38, %v639_v45  ;;  %v1423_v50 = vsub.s32 32, %v1422_v32  ;;  %v1425_v39 = vshll.u32 %v6167_v52, %v1422_v32  ;;  %v1428_v28 = vshll.u32 %v6165_v54, %v1422_v32 }
 0x161   : > { %v1584_v33 = vshll.u32 %v4798_v7, %v1582_v37  ;;  %v1589_v63 = vshll.u32 %v1588_v42, 23  ;;  %v1431_v40 = vshll.u32 %v6169_v57, %v1422_v32  ;;  %v1434_v26 = vshll.u32 %v6173_v59, %v1422_v32 }
 0x162   : > { %v645_v21 = vadd.s32 536870912, %v644_v9  ;;  %v1426_v8 = vshrl.u32 %v6165_v54, %v1423_v50  ;;  %v1429_v5 = vshrl.u32 %v6169_v57, %v1423_v50  ;;  %vm1440_vm6 = vcmp.lt.s32.totalorder %v4850_v29, 1 }
 0x163   : > { %v1586_v47 = vor.u32 %v1585_v1, %v1584_v33  ;;  %v1590_v14 = vor.u32 4788187, %v1589_v63  ;;  %v1432_v15 = vshrl.u32 %v6173_v59, %v1423_v50  ;;  %v1435_v49 = vshrl.u32 %v6175_v61, %v1423_v50 }
 0x164   : > { %vm4867_vm7 = vcmp.le.f32.partialorder %v687_v55, 0.7853982  ;;  %v6239_v7 = vmov 0  ;;  %v4871_v37 = vshrl.u32 %v645_v21, 30  ;;  %v1427_v24 = vor.u32 %v1426_v8, %v1425_v39 }
 0x165   : > { %v6240_v7 = vsel %vm4867_vm7, 4294967295, %v6239_v7  ;;  %v1430_v35 = vor.u32 %v1429_v5, %v1428_v28  ;;  %v1437_v22 = vshll.u32 %v6175_v61, %v1422_v32  ;;  %v1424_v45 = vshrl.u32 %v6167_v52, %v1423_v50 }
 0x166   : > { %6241 = vst [vmem:[#allocation8_spill] sm:$0xff] %v6240_v7  ;;  %v1433_v1 = vor.u32 %v1432_v15, %v1431_v40  ;;  %v1436_v42 = vor.u32 %v1435_v49, %v1434_v26  ;;  %v6242_v38 = vmov 1326507024   ;;  %v1591_v63 = vand.u32 2147483647, %v1590_v14 }
 0x167   : > { %v1438_v33 = vshrl.u32 %v6242_v38, %v1423_v50  ;;  %v647_v13 = vshll.u32 %v4871_v37, 30  ;;  %vm1442_vm8 = vcmp.lt.s32.totalorder %v4850_v29, 3  ;;  %vm1443_vm11 = vcmp.lt.s32.totalorder %v4850_v29, 4  ;;  %v4879_v55 = vpop.eup %4199 }
 0x168   : > { %vm1441_vm13 = vcmp.lt.s32.totalorder %v4850_v29, 2  ;;  %v1448_v32 = vsel %vm1440_vm6, %v1427_v24, %v1430_v35  ;;  %v897_v39 = vshrl.u32 %v896_v2, 23  ;;  %v1593_v28 = vcvt.s32.f32 %v1586_v47 }
 0x169   : > { %v1439_v21 = vor.u32 %v1438_v33, %v1437_v22  ;;  %v4884_v40 = vsub.s32 %v644_v9, %v647_v13  ;;  %v1445_v50 = vsel %vm1443_vm11, %v1433_v1, 2102212464  ;;  %v1449_v26 = vsel %vm1443_vm11, %v1436_v42, 920167782 }
 0x16a   : > { %v1444_v8 = vsel %vm1440_vm6, %v1424_v45, %v1427_v24  ;;  %v1450_v5 = vsel %vm1442_vm8, %v1433_v1, %v1449_v26  ;;  %v1452_v14 = vsel %vm1440_vm6, %v1430_v35, %v1433_v1  ;;  %v1456_v15 = vshll.u32 %v1416_v62, 8 }
 0x16b   : > { %vm1513_vm2 = vcmp.lt.s32.totalorder %v4620_v60, 0  ;;  %v1594_v13 = vmul.f32 %v1593_v28, %v1591_v63  ;;  %v650_v2 = vsub.s32 0, %v4884_v40  ;;  %v1451_v9 = vsel %vm1441_vm13, %v1448_v32, %v1450_v5 }
 0x16c   : > { %v1453_v47 = vsel %vm1443_vm11, %v1439_v21, 1326507024  ;;  %v1446_v49 = vsel %vm1442_vm8, %v1430_v35, %v1445_v50  ;;  %v4906_v22 = vmul.u32.u64.low %v1456_v15, %v1451_v9  ;;  %v4907_v45 = vmul.u32.u64.high %v1456_v15, %v1451_v9, %v4906_v22 }
 0x16d   : > { %v1454_v24 = vsel %vm1442_vm8, %v1436_v42, %v1453_v47  ;;  %v773_v62 = vsub.s32 4, %v4716_v51  ;;  %v3943_v1 = vmin.u32 %v650_v2, %v4884_v40  ;;  %v3954_v63 = vadd.s32 4294967169, %v897_v39 }
 0x16e   : > { %v1455_v33 = vsel %vm1441_vm13, %v1452_v14, %v1454_v24  ;;  %v4917_v21 = vsel %vm4867_vm7, %v4577_v44, %v772_v25  ;;  %v6164_v42 = vand.u32 2147483647, %v4832_v56  ;;  %4201 = vcosq.f32 %v4841_v4 }
 0x16f   : > { %v4919_v35 = vmul.u32.u64.low %v1456_v15, %v1455_v33  ;;  %v4920_v32 = vmul.u32.u64.high %v1456_v15, %v1455_v33, %v4919_v35  ;;  %v652_v28 = vclz %v3943_v1  ;;  %v1447_v50 = vsel %vm1441_vm13, %v1444_v8, %v1446_v49  ;;  %v4941_v8 = vpop.f32.mrf.mxu1 }
 0x170   : > { %v903_v26 = vadd.s32 1, %v3954_v63  ;;  %v4931_v39 = vsel %vm1204_vm5, %v1288_v0, %v4627_v48  ;;  %4203 = vsinq.f32 %v4841_v4  ;;  %v1595_v25 = vxor.u32 2147483648, %v1594_v13  ;;  %6244 = vst [vmem:[#allocation10_spill] sm:$0xff] %v4941_v8 }
 0x171   : > { %v1466_v5 = vadd.s32 1, %v4907_v45  ;;  %v4938_v14 = vsel %vm689_vm0, %v773_v62, %v4716_v51  ;;  %4205 = vcosq.f32 %v4917_v21  ;;  %v3944_v29 = vadd.s32 4294967294, %v652_v28 }
 0x172   : > { %6243 = vst [vmem:[#allocation9_spill] sm:$0xff] %v4938_v14  ;;  %vm904_vm3 = vcmp.gt.s32.totalorder %v903_v26, 0  ;;  %v1463_v2 = vmul.u32 %v1456_v15, %v1447_v50  ;;  %vm1465_vm5 = vc.u32 %v4920_v32, %v4906_v22  ;;  %v900_v48 = vand.u32 8388607, %v6164_v42 }
 0x173   : > { %v905_v0 = vsel %vm904_vm3, %v903_v26, 0  ;;  %v640_v4 = vadd.s32 %v4821_v20, %v4826_v30  ;;  %vm3945_vm4 = vcmp.lt.s32.totalorder %v3944_v29, 0  ;;  %v1467_v51 = vsel %vm1465_vm5, %v1466_v5, %v4907_v45 }
 0x174   : > { %v907_v9 = vand.u32 31, %v905_v0  ;;  %v4952_v47 = vsel %vm1513_vm2, %v1595_v25, %v1594_v13  ;;  %v655_v49 = vsel %vm3945_vm4, 0, %v3944_v29  ;;  %v1468_v15 = vadd.s32 %v1467_v51, %v1463_v2 }
 0x175   : > { %v1720_v24 = vand.u32 2139095040, %v4941_v8  ;;  %v656_v62 = vsub.s32 32, %v655_v49  ;;  %v660_v1 = vsub.s32 4294967266, %v655_v49  ;;  %v4955_v33 = vshrl.u32 %v905_v0, 5 }
 0x176   : > { %v908_v63 = vsub.s32 32, %v907_v9  ;;  %v657_v35 = vshll.u32 %v4884_v40, %v655_v49  ;;  %v1469_v20 = vadd.s32 536870912, %v1468_v15  ;;  %v910_v30 = vshll.u32 %v6167_v52, %v907_v9 }
 0x177   : > { %v913_v45 = vshll.u32 %v6165_v54, %v907_v9  ;;  %v658_v28 = vshrl.u32 %v640_v4, %v656_v62  ;;  %v661_v50 = vadd.s32 127, %v660_v1  ;;  %v916_v26 = vshll.u32 %v6169_v57, %v907_v9 }
 0x178   : > { %v911_v13 = vshrl.u32 %v6165_v54, %v908_v63  ;;  %v4962_v25 = vshrl.u32 %v1469_v20, 30  ;;  %v914_v5 = vshrl.u32 %v6169_v57, %v908_v63  ;;  %v917_v29 = vshrl.u32 %v6173_v59, %v908_v63 }
 0x179   : > { %v919_v2 = vshll.u32 %v6173_v59, %v907_v9  ;;  %v662_v40 = vshll.u32 %v661_v50, 23  ;;  %v901_v0 = vor.u32 8388608, %v900_v48  ;;  %v920_v51 = vshrl.u32 %v6175_v61, %v908_v63 }
 0x17a   : > { %v6177_v49 = vand.u32 2147483647, %v4941_v8  ;;  %v659_v4 = vor.u32 %v658_v28, %v657_v35  ;;  %v1471_v62 = vshll.u32 %v4962_v25, 30  ;;  %v912_v1 = vor.u32 %v911_v13, %v910_v30 }
 0x17b   : > { %v1721_v42 = vshrl.u32 %v1720_v24, 23  ;;  %v663_v54 = vor.u32 4788187, %v662_v40  ;;  %v915_v20 = vor.u32 %v914_v5, %v913_v45  ;;  %v921_v52 = vor.u32 %v920_v51, %v919_v2  ;;  %v4971_v44 = vpop.eup %4201 }
 0x17c   : > { %v922_v57 = vshll.u32 %v6175_v61, %v907_v9  ;;  %6245 = vst [vmem:[#allocation11_spill] sm:$0xff] %v4971_v44  ;;  %v6246_v59 = vand.u32 2147483647, %v4620_v60  ;;  %v6247_v48 = vmov 0  ;;  %v4979_v50 = vsub.s32 %v1468_v15, %v1471_v62 }
 0x17d   : > { %v918_v35 = vor.u32 %v917_v29, %v916_v26  ;;  %v923_v28 = vshrl.u32 %v6242_v38, %v908_v63  ;;  %vm925_vm6 = vcmp.lt.s32.totalorder %v4955_v33, 1  ;;  %v4983_v24 = vpop.eup %4203  ;;  %v6251_v30 = vmov 683565275  }
 0x17e   : > { %vm4975_vm0 = vcmp.le.f32.partialorder %v6246_v59, 0.7853982  ;;  %6250 = vst [vmem:[#allocation13_spill] sm:$0xff] %v4983_v24  ;;  %v909_v45 = vshrl.u32 %v6251_v30, %v908_v63  ;;  %vm927_vm8 = vcmp.lt.s32.totalorder %v4955_v33, 3  ;;  %vm928_vm11 = vcmp.lt.s32.totalorder %v4955_v33, 4  ;;  %v4988_v59 = vpop.eup %4205 }
 0x17f   : > { %v6248_v48 = vsel %vm4975_vm0, 4294967295, %v6247_v48  ;;  %v941_v9 = vshll.u32 %v901_v0, 8  ;;  %6252 = vst [vmem:[#allocation14_spill] sm:$0xff] %v4988_v59  ;;  %v1474_v13 = vsub.s32 0, %v4979_v50  ;;  %v924_v15 = vor.u32 %v923_v28, %v922_v57 }
 0x180   : > { %6249 = vst [vmem:[#allocation12_spill] sm:$0xff] %v6248_v48  ;;  %vm926_vm13 = vcmp.lt.s32.totalorder %v4955_v33, 2  ;;  %v930_v26 = vsel %vm928_vm11, %v918_v35, 2102212464  ;;  %v664_v5 = vand.u32 2147483647, %v663_v54  ;;  %v933_v29 = vsel %vm925_vm6, %v912_v1, %v915_v20 }
 0x181   : > { %v934_v63 = vsel %vm928_vm11, %v921_v52, 920167782  ;;  %v3986_v2 = vadd.s32 4294967169, %v1721_v42  ;;  %v666_v40 = vcvt.s32.f32 %v659_v4  ;;  %v3975_v0 = vmin.u32 %v1474_v13, %v4979_v50 }
 0x182   : > { %v935_v51 = vsel %vm927_vm8, %v918_v35, %v934_v63  ;;  %v937_v57 = vsel %vm925_vm6, %v915_v20, %v918_v35  ;;  %v929_v62 = vsel %vm925_vm6, %v909_v45, %v912_v1  ;;  %v931_v54 = vsel %vm927_vm8, %v915_v20, %v930_v26 }
 0x183   : > { %v936_v28 = vsel %vm926_vm13, %v933_v29, %v935_v51  ;;  %v938_v42 = vsel %vm928_vm11, %v924_v15, 1326507024  ;;  %v1476_v4 = vclz %v3975_v0  ;;  %v667_v35 = vmul.f32 %v666_v40, %v664_v5 }
 0x184   : > { %v939_v13 = vsel %vm927_vm8, %v921_v52, %v938_v42  ;;  %v5013_v63 = vmul.u32.u64.low %v941_v9, %v936_v28  ;;  %v5014_v61 = vmul.u32.u64.high %v941_v9, %v936_v28, %v5013_v63  ;;  %v1724_v20 = vand.u32 8388607, %v6177_v49 }
 0x185   : > { %v940_v1 = vsel %vm926_vm13, %v937_v57, %v939_v13  ;;  %v1727_v45 = vadd.s32 1, %v3986_v2  ;;  %v3976_v26 = vadd.s32 4294967294, %v1476_v4  ;;  %v932_v15 = vsel %vm926_vm13, %v929_v62, %v931_v54 }
 0x186   : > { %v5023_v29 = vmul.u32.u64.low %v941_v9, %v940_v1  ;;  %v5024_v0 = vmul.u32.u64.high %v941_v9, %v940_v1, %v5023_v29  ;;  %4207 = vsinq.f32 %v4917_v21  ;;  %v5032_v5 = vsel %vm4975_vm0, %v4620_v60, %v4952_v47 }
 0x187   : > { %vm1728_vm3 = vcmp.gt.s32.totalorder %v1727_v45, 0  ;;  %v1464_v2 = vadd.s32 %v4906_v22, %v4920_v32  ;;  %vm3977_vm5 = vcmp.lt.s32.totalorder %v3976_v26, 0  ;;  %v951_v33 = vadd.s32 1, %v5014_v61 }
 0x188   : > { %v1729_v40 = vsel %vm1728_vm3, %v1727_v45, 0  ;;  %vm586_vm4 = vcmp.lt.s32.totalorder %v4669_v16, 0  ;;  %v1479_v51 = vsel %vm3977_vm5, 0, %v3976_v26  ;;  %v948_v21 = vmul.u32 %v941_v9, %v932_v15 }
 0x189   : > { %v1725_v57 = vor.u32 8388608, %v1724_v20  ;;  %v1731_v62 = vand.u32 31, %v1729_v40  ;;  %v668_v54 = vxor.u32 2147483648, %v667_v35  ;;  %v1480_v28 = vsub.s32 32, %v1479_v51 }
 0x18a   : > { %v1484_v42 = vsub.s32 4294967266, %v1479_v51  ;;  %v5038_v4 = vshrl.u32 %v1729_v40, 5  ;;  %vm950_vm6 = vc.u32 %v5024_v0, %v5013_v63  ;;  %v6253_v32 = vmov 2475754826  }
 0x18b   : > { %v1732_v47 = vsub.s32 32, %v1731_v62  ;;  %v1734_v22 = vshll.u32 %v6251_v30, %v1731_v62  ;;  %v1737_v13 = vshll.u32 %v6253_v32, %v1731_v62  ;;  %v1482_v1 = vshrl.u32 %v1464_v2, %v1480_v28 }
 0x18c   : > { %v1485_v45 = vadd.s32 127, %v1484_v42  ;;  %v952_v26 = vsel %vm950_vm6, %v951_v33, %v5014_v61  ;;  %v6254_v9 = vmov 2131351028   ;;  %v1481_v15 = vshll.u32 %v4979_v50, %v1479_v51 }
 0x18d   : > { %v1740_v20 = vshll.u32 %v6254_v9, %v1731_v62  ;;  %v953_v29 = vadd.s32 %v952_v26, %v948_v21  ;;  %v1735_v40 = vshrl.u32 %v6253_v32, %v1732_v47  ;;  %v1738_v49 = vshrl.u32 %v6254_v9, %v1732_v47 }
 0x18e   : > { %v1486_v52 = vshll.u32 %v1485_v45, 23  ;;  %v1733_v48 = vshrl.u32 %v6251_v30, %v1732_v47  ;;  %v6255_v59 = vmov 2102212464   ;;  %v1483_v2 = vor.u32 %v1482_v1, %v1481_v15 }
 0x18f   : > { %v1741_v7 = vshrl.u32 %v6255_v59, %v1732_v47  ;;  %v1743_v14 = vshll.u32 %v6255_v59, %v1731_v62  ;;  %v954_v28 = vadd.s32 536870912, %v953_v29  ;;  %v1736_v42 = vor.u32 %v1735_v40, %v1734_v22 }
 0x190   : > { %v6256_v61 = vmov 920167782   ;;  %v1487_v44 = vor.u32 4788187, %v1486_v52  ;;  %v1739_v24 = vor.u32 %v1738_v49, %v1737_v13  ;;  %v6257_v21 = vand.u32 2147483647, %v4669_v16 }
 0x191   : > { %v1744_v33 = vshrl.u32 %v6256_v61, %v1732_v47  ;;  %v1742_v50 = vor.u32 %v1741_v7, %v1740_v20  ;;  %v1746_v51 = vshll.u32 %v6256_v61, %v1731_v62  ;;  %v6258_v45 = vmov 0 }
 0x192   : > { %vm5056_vm8 = vcmp.le.f32.partialorder %v6257_v21, 0.7853982  ;;  %v5060_v26 = vshrl.u32 %v954_v28, 30  ;;  %v1747_v1 = vshrl.u32 %v6242_v38, %v1732_v47  ;;  %vm1749_vm11 = vcmp.lt.s32.totalorder %v5038_v4, 1 }
 0x193   : > { %v6259_v45 = vsel %vm5056_vm8, 4294967295, %v6258_v45  ;;  %v1745_v34 = vor.u32 %v1744_v33, %v1743_v14  ;;  %v669_v52 = vsel %vm586_vm4, %v668_v54, %v667_v35  ;;  %v1488_v49 = vand.u32 2147483647, %v1487_v44  ;;  %v5070_v13 = vpop.eup %4207  ;;  %v5079_v54 = vpop.f32.mrf.mxu0 }
 0x194   : > { %6260 = vst [vmem:[#allocation15_spill] sm:$0xff] %v6259_v45  ;;  %vm1751_vm13 = vcmp.lt.s32.totalorder %v5038_v4, 3  ;;  %vm1752_vm3 = vcmp.lt.s32.totalorder %v5038_v4, 4  ;;  %v956_v7 = vshll.u32 %v5060_v26, 30  ;;  %v1748_v62 = vor.u32 %v1747_v1, %v1746_v51  ;;  %6261 = vst [vmem:[#allocation16_spill] sm:$0xff] %v5070_v13 }
 0x195   : > { %vm1750_vm5 = vcmp.lt.s32.totalorder %v5038_v4, 2  ;;  %v1765_v22 = vshll.u32 %v1725_v57, 8  ;;  %vm1410_vm6 = vcmp.lt.s32.totalorder %v4771_v58, 0  ;;  %v1490_v14 = vcvt.s32.f32 %v1483_v2  ;;  %6262 = vst [vmem:[#allocation17_spill] sm:$0xff] %v5079_v54 }
 0x196   : > { %v1754_v47 = vsel %vm1752_vm3, %v1742_v50, 2102212464  ;;  %v1757_v44 = vsel %vm1749_vm11, %v1736_v42, %v1739_v24  ;;  %v1758_v35 = vsel %vm1752_vm3, %v1745_v34, 920167782  ;;  %v5081_v20 = vsub.s32 %v953_v29, %v956_v7 }
 0x197   : > { %v1753_v57 = vsel %vm1749_vm11, %v1733_v48, %v1736_v42  ;;  %v1759_v15 = vsel %vm1751_vm13, %v1742_v50, %v1758_v35  ;;  %v1491_v2 = vmul.f32 %v1490_v14, %v1488_v49  ;;  %v1755_v28 = vsel %vm1751_vm13, %v1739_v24, %v1754_v47 }
 0x198   : > { %v1760_v33 = vsel %vm1750_vm5, %v1757_v44, %v1759_v15  ;;  %v1761_v51 = vsel %vm1749_vm11, %v1739_v24, %v1742_v50  ;;  %v959_v29 = vsub.s32 0, %v5081_v20  ;;  %v1762_v48 = vsel %vm1752_vm3, %v1748_v62, 1326507024 }
 0x199   : > { %v5097_v42 = vmul.u32.u64.low %v1765_v22, %v1760_v33  ;;  %v5098_v21 = vmul.u32.u64.high %v1765_v22, %v1760_v33, %v5097_v42  ;;  %4209 = vcosq.f32 %v5032_v5  ;;  %v670_v1 = vsub.s32 4, %v4871_v37 }
 0x19a   : > { %v1763_v49 = vsel %vm1751_vm13, %v1745_v34, %v1762_v48  ;;  %v793_v7 = vand.u32 2139095040, %v5079_v54  ;;  %v6263_v24 = vand.u32 2147483647, %v4771_v58  ;;  %v6264_v50 = vmov 0 }
 0x19b   : > { %v1494_v62 = vsub.s32 4, %v4962_v25  ;;  %v3955_v14 = vmin.u32 %v959_v29, %v5081_v20  ;;  %v1756_v47 = vsel %vm1750_vm5, %v1753_v57, %v1755_v28  ;;  %v1764_v44 = vsel %vm1750_vm5, %v1761_v51, %v1763_v49 }
 0x19c   : > { %vm5108_vm11 = vcmp.le.f32.partialorder %v6263_v24, 0.7853982  ;;  %v672_v34 = vsel %vm5056_vm8, %v4669_v16, %v669_v52  ;;  %v5121_v35 = vmul.u32.u64.low %v1765_v22, %v1764_v44  ;;  %v5122_v15 = vmul.u32.u64.high %v1765_v22, %v1764_v44, %v5121_v35 }
 0x19d   : > { %v6265_v50 = vsel %vm5108_vm11, 4294967295, %v6264_v50  ;;  %v794_v33 = vshrl.u32 %v793_v7, 23  ;;  %v1492_v48 = vxor.u32 2147483648, %v1491_v2  ;;  %v961_v24 = vclz %v3955_v14  ;;  %v5145_v14 = vpop.f32.mrf.mxu1 }
 0x19e   : > { %6266 = vst [vmem:[#allocation18_spill] sm:$0xff] %v6265_v50  ;;  %v1775_v40 = vadd.s32 1, %v5098_v21  ;;  %v6267_v29 = vand.u32 2147483647, %v5079_v54  ;;  %v6268_v57 = vsub.s32 4, %v4786_v41  ;;  %4211 = vsinq.f32 %v5032_v5  ;;  %6271 = vst [vmem:[#allocation21_spill] sm:$0xff] %v5145_v14 }
 0x19f   : > { %v1772_v52 = vmul.u32 %v1765_v22, %v1756_v47  ;;  %v3950_v28 = vadd.s32 4294967169, %v794_v33  ;;  %v5138_v51 = vsel %vm586_vm4, %v670_v1, %v4871_v37  ;;  %4213 = vcosq.f32 %v672_v34 }
 0x1a0   : > { %v797_v13 = vand.u32 8388607, %v6267_v29  ;;  %v5132_v4 = vsel %vm1513_vm2, %v6268_v57, %v4786_v41  ;;  %6269 = vst [vmem:[#allocation19_spill] sm:$0xff] %v5138_v51  ;;  %v5143_v49 = vsel %vm1410_vm6, %v1494_v62, %v4962_v25  ;;  %v3956_v7 = vadd.s32 4294967294, %v961_v24 }
 0x1a1   : > { %6270 = vst [vmem:[#allocation20_spill] sm:$0xff] %v5143_v49  ;;  %4215 = vsinq.f32 %v672_v34  ;;  %v949_v41 = vadd.s32 %v5013_v63, %v5024_v0  ;;  %vm1774_vm2 = vc.u32 %v5122_v15, %v5097_v42  ;;  %v800_v5 = vadd.s32 1, %v3950_v28 }
 0x1a2   : > { %v1493_v37 = vsel %vm1410_vm6, %v1492_v48, %v1491_v2  ;;  %vm3957_vm4 = vcmp.lt.s32.totalorder %v3956_v7, 0  ;;  %v1776_v22 = vsel %vm1774_vm2, %v1775_v40, %v5098_v21  ;;  %v798_v1 = vor.u32 8388608, %v797_v13 }
 0x1a3   : > { %v964_v25 = vsel %vm3957_vm4, 0, %v3956_v7  ;;  %v1777_v62 = vadd.s32 %v1776_v22, %v1772_v52  ;;  %vm801_vm13 = vcmp.gt.s32.totalorder %v800_v5, 0  ;;  %v1617_v47 = vand.u32 2139095040, %v5145_v14 }
 0x1a4   : > { %v965_v44 = vsub.s32 32, %v964_v25  ;;  %v969_v34 = vsub.s32 4294967266, %v964_v25  ;;  %v802_v0 = vsel %vm801_vm13, %v800_v5, 0  ;;  %v5159_v35 = vsel %vm5108_vm11, %v4771_v58, %v1493_v37 }
 0x1a5   : > { %v1778_v2 = vadd.s32 536870912, %v1777_v62  ;;  %v804_v33 = vand.u32 31, %v802_v0  ;;  %v966_v13 = vshll.u32 %v5081_v20, %v964_v25  ;;  %v5163_v24 = vshll.u32 %v798_v1, 8 }
 0x1a6   : > { %v967_v21 = vshrl.u32 %v949_v41, %v965_v44  ;;  %v970_v48 = vadd.s32 127, %v969_v34  ;;  %v1618_v28 = vshrl.u32 %v1617_v47, 23  ;;  %v5168_v7 = vpop.eup %4209  ;;  %v803_v41 = vshrl.u32 %v802_v0, 5 }
 0x1a7   : > { %v5165_v29 = vshrl.u32 %v1778_v2, 30  ;;  %v805_v57 = vsub.s32 32, %v804_v33  ;;  %v807_v52 = vshll.u32 %v6251_v30, %v804_v33  ;;  %6272 = vst [vmem:[#allocation22_spill] sm:$0xff] %v5168_v7  ;;  %v810_v22 = vshll.u32 %v6253_v32, %v804_v33 }
 0x1a8   : > { %v968_v5 = vor.u32 %v967_v21, %v966_v13  ;;  %v971_v37 = vshll.u32 %v970_v48, 23  ;;  %v813_v63 = vshll.u32 %v6254_v9, %v804_v33  ;;  %v816_v25 = vshll.u32 %v6255_v59, %v804_v33 }
 0x1a9   : > { %v1780_v20 = vshll.u32 %v5165_v29, 30  ;;  %v808_v1 = vshrl.u32 %v6253_v32, %v805_v57  ;;  %v806_v34 = vshrl.u32 %v6251_v30, %v805_v57  ;;  %v811_v47 = vshrl.u32 %v6254_v9, %v805_v57 }
 0x1aa   : > { %v972_v44 = vor.u32 4788187, %v971_v37  ;;  %v814_v2 = vshrl.u32 %v6255_v59, %v805_v57  ;;  %v975_v13 = vcvt.s32.f32 %v968_v5  ;;  %v817_v40 = vshrl.u32 %v6256_v61, %v805_v57 }
 0x1ab   : > { %v5178_v21 = vsub.s32 %v1777_v62, %v1780_v20  ;;  %v809_v48 = vor.u32 %v808_v1, %v807_v52  ;;  %v5181_v16 = vpop.eup %4211  ;;  %vm895_vm3 = vcmp.lt.s32.totalorder %v4832_v56, 0  ;;  %v812_v45 = vor.u32 %v811_v47, %v810_v22 }
 0x1ac   : > { %6273 = vst [vmem:[#allocation23_spill] sm:$0xff] %v5181_v16  ;;  %v973_v0 = vand.u32 2147483647, %v972_v44  ;;  %v815_v51 = vor.u32 %v814_v2, %v813_v63  ;;  %v819_v37 = vshll.u32 %v6256_v61, %v804_v33  ;;  %v5185_v58 = vpop.eup %4213  ;;  %v818_v50 = vor.u32 %v817_v40, %v816_v25 }
 0x1ad   : > { %6274 = vst [vmem:[#allocation24_spill] sm:$0xff] %v5185_v58  ;;  %v1783_v60 = vsub.s32 0, %v5178_v21  ;;  %v820_v62 = vshrl.u32 %v6242_v38, %v805_v57  ;;  %vm822_vm5 = vcmp.lt.s32.totalorder %v803_v41, 1  ;;  %vm824_vm6 = vcmp.lt.s32.totalorder %v803_v41, 3 }
 0x1ae   : > { %v5189_v52 = vpop.eup %4215  ;;  %v976_v5 = vmul.f32 %v975_v13, %v973_v0  ;;  %vm825_vm2 = vcmp.lt.s32.totalorder %v803_v41, 4  ;;  %v3982_v20 = vadd.s32 4294967169, %v1618_v28  ;;  %v6276_v1 = vand.u32 2147483647, %v4832_v56 }
 0x1af   : > { %6275 = vst [vmem:[#allocation25_spill] sm:$0xff] %v5189_v52  ;;  %v6277_v63 = vmov 0  ;;  %v3987_v33 = vmin.u32 %v1783_v60, %v5178_v21  ;;  %v821_v22 = vor.u32 %v820_v62, %v819_v37  ;;  %vm823_vm13 = vcmp.lt.s32.totalorder %v803_v41, 2 }
 0x1b0   : > { %vm5193_vm4 = vcmp.le.f32.partialorder %v6276_v1, 0.7853982  ;;  %v827_v40 = vsel %vm825_vm2, %v815_v51, 2102212464  ;;  %v977_v57 = vxor.u32 2147483648, %v976_v5  ;;  %v826_v25 = vsel %vm822_vm5, %v806_v34, %v809_v48 }
 0x1b1   : > { %v6278_v63 = vsel %vm5193_vm4, 4294967295, %v6277_v63  ;;  %v830_v44 = vsel %vm822_vm5, %v809_v48, %v812_v45  ;;  %v831_v47 = vsel %vm825_vm2, %v818_v50, 920167782  ;;  %v1785_v28 = vclz %v3987_v33  ;;  %v5212_v48 = vpop.f32.mrf.mxu0 }
 0x1b2   : > { %6279 = vst [vmem:[#allocation26_spill] sm:$0xff] %v6278_v63  ;;  %v828_v2 = vsel %vm824_vm6, %v812_v45, %v827_v40  ;;  %v832_v13 = vsel %vm824_vm6, %v815_v51, %v831_v47  ;;  %v834_v0 = vsel %vm822_vm5, %v812_v45, %v815_v51  ;;  %4217 = vcosq.f32 %v5159_v35 }
 0x1b3   : > { %v833_v60 = vsel %vm823_vm13, %v830_v44, %v832_v13  ;;  %v835_v37 = vsel %vm825_vm2, %v821_v22, 1326507024  ;;  %v6280_v62 = vand.u32 2147483647, %v5145_v14  ;;  %v3988_v1 = vadd.s32 4294967294, %v1785_v28 }
 0x1b4   : > { %v836_v33 = vsel %vm824_vm6, %v818_v50, %v835_v37  ;;  %v1624_v40 = vadd.s32 1, %v3982_v20  ;;  %v829_v45 = vsel %vm823_vm13, %v826_v25, %v828_v2  ;;  %v978_v22 = vsel %vm895_vm3, %v977_v57, %v976_v5 }
 0x1b5   : > { %v5210_v34 = vand.u32 8388607, %v6280_v62  ;;  %v837_v51 = vsel %vm823_vm13, %v834_v0, %v836_v33  ;;  %v5219_v44 = vmul.u32.u64.low %v5163_v24, %v833_v60  ;;  %v5220_v13 = vmul.u32.u64.high %v5163_v24, %v833_v60, %v5219_v44 }
 0x1b6   : > { %vm3989_vm5 = vcmp.lt.s32.totalorder %v3988_v1, 0  ;;  %v5226_v28 = vmul.u32.u64.low %v5163_v24, %v837_v51  ;;  %v5227_v62 = vmul.u32.u64.high %v5163_v24, %v837_v51, %v5226_v28  ;;  %v1773_v50 = vadd.s32 %v5097_v42, %v5122_v15 }
 0x1b7   : > { %v1788_v20 = vsel %vm3989_vm5, 0, %v3988_v1  ;;  %v1622_v41 = vor.u32 8388608, %v5210_v34  ;;  %vm1625_vm6 = vcmp.gt.s32.totalorder %v1624_v40, 0  ;;  %v845_v0 = vmul.u32 %v5163_v24, %v829_v45 }
 0x1b8   : > { %v1789_v25 = vsub.s32 32, %v1788_v20  ;;  %v1793_v2 = vsub.s32 4294967266, %v1788_v20  ;;  %v1626_v60 = vsel %vm1625_vm6, %v1624_v40, 0  ;;  %v5236_v5 = vsel %vm5193_vm4, %v4832_v56, %v978_v22 }
 0x1b9   : > { %v848_v57 = vadd.s32 1, %v5220_v13  ;;  %v1628_v37 = vand.u32 31, %v1626_v60  ;;  %v1102_v33 = vand.u32 2139095040, %v5212_v48  ;;  %v1790_v42 = vshll.u32 %v5178_v21, %v1788_v20 }
 0x1ba   : > { %v1791_v15 = vshrl.u32 %v1773_v50, %v1789_v25  ;;  %v1794_v34 = vadd.s32 127, %v1793_v2  ;;  %vm847_vm2 = vc.u32 %v5227_v62, %v5219_v44  ;;  %v1627_v47 = vshrl.u32 %v1626_v60, 5 }
 0x1bb   : > { %v849_v24 = vsel %vm847_vm2, %v848_v57, %v5220_v13  ;;  %v1629_v1 = vsub.s32 32, %v1628_v37  ;;  %v1631_v40 = vshll.u32 %v6251_v30, %v1628_v37  ;;  %v1634_v45 = vshll.u32 %v6253_v32, %v1628_v37 }
 0x1bc   : > { %v1792_v51 = vor.u32 %v1791_v15, %v1790_v42  ;;  %v1795_v22 = vshll.u32 %v1794_v34, 23  ;;  %v850_v28 = vadd.s32 %v849_v24, %v845_v0  ;;  %v1637_v50 = vshll.u32 %v6254_v9, %v1628_v37 }
 0x1bd   : > { %v1632_v63 = vshrl.u32 %v6253_v32, %v1629_v1  ;;  %v1635_v21 = vshrl.u32 %v6254_v9, %v1629_v1  ;;  %v1638_v20 = vshrl.u32 %v6255_v59, %v1629_v1  ;;  %v1640_v13 = vshll.u32 %v6255_v59, %v1628_v37 }
 0x1be   : > { %v1796_v25 = vor.u32 4788187, %v1795_v22  ;;  %v851_v2 = vadd.s32 536870912, %v850_v28  ;;  %v1103_v57 = vshrl.u32 %v1102_v33, 23  ;;  %vm1719_vm13 = vcmp.lt.s32.totalorder %v4941_v8, 0 }
 0x1bf   : > { %v1799_v58 = vcvt.s32.f32 %v1792_v51  ;;  %v1633_v42 = vor.u32 %v1632_v63, %v1631_v40  ;;  %v1636_v15 = vor.u32 %v1635_v21, %v1634_v45  ;;  %v1641_v0 = vshrl.u32 %v6256_v61, %v1629_v1  ;;  %v5253_v60 = vpop.eup %4217 }
 0x1c0   : > { %v1797_v34 = vand.u32 2147483647, %v1796_v25  ;;  %v5255_v24 = vshrl.u32 %v851_v2, 30  ;;  %v1643_v52 = vshll.u32 %v6256_v61, %v1628_v37  ;;  %v1644_v22 = vshrl.u32 %v6242_v38, %v1629_v1 }
 0x1c1   : > { %v1630_v49 = vshrl.u32 %v6251_v30, %v1629_v1  ;;  %v1639_v7 = vor.u32 %v1638_v20, %v1637_v50  ;;  %v1642_v33 = vor.u32 %v1641_v0, %v1640_v13  ;;  %vm1646_vm5 = vcmp.lt.s32.totalorder %v1627_v47, 1 }
 0x1c2   : > { %v1800_v16 = vmul.f32 %v1799_v58, %v1797_v34  ;;  %v853_v63 = vshll.u32 %v5255_v24, 30  ;;  %v1645_v40 = vor.u32 %v1644_v22, %v1643_v52  ;;  %v1662_v45 = vshll.u32 %v1622_v41, 8 }
 0x1c3   : > { %vm1647_vm6 = vcmp.lt.s32.totalorder %v1627_v47, 2  ;;  %vm1648_vm2 = vcmp.lt.s32.totalorder %v1627_v47, 3  ;;  %vm1649_vm12 = vcmp.lt.s32.totalorder %v1627_v47, 4  ;;  %v3962_v51 = vadd.s32 4294967169, %v1103_v57 }
 0x1c4   : > { %v6281_v21 = vand.u32 2147483647, %v4941_v8  ;;  %v6282_v37 = vmov 0  ;;  %v1801_v25 = vxor.u32 2147483648, %v1800_v16  ;;  %v5267_v1 = vsub.s32 %v850_v28, %v853_v63 }
 0x1c5   : > { %v1651_v50 = vsel %vm1649_vm12, %v1639_v7, 2102212464  ;;  %v1654_v58 = vsel %vm1646_vm5, %v1633_v42, %v1636_v15  ;;  %v1650_v20 = vsel %vm1646_vm5, %v1630_v49, %v1633_v42  ;;  %v1655_v52 = vsel %vm1649_vm12, %v1642_v33, 920167782 }
 0x1c6   : > { %vm5263_vm15 = vcmp.le.f32.partialorder %v6281_v21, 0.7853982  ;;  %v1658_v41 = vsel %vm1646_vm5, %v1636_v15, %v1639_v7  ;;  %v1659_v2 = vsel %vm1649_vm12, %v1645_v40, 1326507024  ;;  %v856_v13 = vsub.s32 0, %v5267_v1 }
 0x1c7   : > { %v6283_v37 = vsel %vm5263_vm15, 4294967295, %v6282_v37  ;;  %v1652_v57 = vsel %vm1648_vm2, %v1636_v15, %v1651_v50  ;;  %v1656_v0 = vsel %vm1648_vm2, %v1639_v7, %v1655_v52  ;;  %v6285_v34 = vand.u32 2147483647, %v5212_v48 }
 0x1c8   : > { %6284 = vst [vmem:[#allocation27_spill] sm:$0xff] %v6283_v37  ;;  %4219 = vsinq.f32 %v5159_v35  ;;  %v1803_v28 = vsub.s32 4, %v5165_v29  ;;  %v1657_v63 = vsel %vm1647_vm6, %v1654_v58, %v1656_v0  ;;  %v1660_v49 = vsel %vm1648_vm2, %v1642_v33, %v1659_v2 }
 0x1c9   : > { %v1106_v22 = vand.u32 8388607, %v6285_v34  ;;  %4221 = vcosq.f32 %v5236_v5  ;;  %v1802_v42 = vsel %vm1719_vm13, %v1801_v25, %v1800_v16  ;;  %v3951_v15 = vmin.u32 %v856_v13, %v5267_v1 }
 0x1ca   : > { %v1661_v7 = vsel %vm1647_vm6, %v1658_v41, %v1660_v49  ;;  %v1653_v40 = vsel %vm1647_vm6, %v1650_v20, %v1652_v57  ;;  %v1109_v35 = vadd.s32 1, %v3962_v51  ;;  %v6286_v2 = vsub.s32 4, %v5060_v26  ;;  %v5307_v51 = vpop.f32.mrf.mxu1 }
 0x1cb   : > { %v5287_v21 = vmul.u32.u64.low %v1662_v45, %v1661_v7  ;;  %v5288_v50 = vmul.u32.u64.high %v1662_v45, %v1661_v7, %v5287_v21  ;;  %v858_v52 = vclz %v3951_v15  ;;  %v1107_v33 = vor.u32 8388608, %v1106_v22 }
 0x1cc   : > { %v5290_v34 = vmul.u32.u64.low %v1662_v45, %v1657_v63  ;;  %v5291_v58 = vmul.u32.u64.high %v1662_v45, %v1657_v63, %v5290_v34  ;;  %v5299_v16 = vsel %vm895_vm3, %v6286_v2, %v5060_v26  ;;  %4223 = vsinq.f32 %v5236_v5 }
 0x1cd   : > { %6287 = vst [vmem:[#allocation28_spill] sm:$0xff] %v5299_v16  ;;  %v5305_v47 = vsel %vm1719_vm13, %v1803_v28, %v5165_v29  ;;  %vm1110_vm12 = vcmp.gt.s32.totalorder %v1109_v35, 0  ;;  %v846_v25 = vadd.s32 %v5219_v44, %v5227_v62  ;;  %v3952_v20 = vadd.s32 4294967294, %v858_v52 }
 0x1ce   : > { %6288 = vst [vmem:[#allocation29_spill] sm:$0xff] %v5305_v47  ;;  %v1111_v13 = vsel %vm1110_vm12, %v1109_v35, 0  ;;  %v5315_v26 = vsel %vm5263_vm15, %v4941_v8, %v1802_v42  ;;  %v1669_v5 = vmul.u32 %v1662_v45, %v1653_v40  ;;  %vm1671_vm3 = vc.u32 %v5288_v50, %v5290_v34 }
 0x1cf   : > { %v1113_v29 = vand.u32 31, %v1111_v13  ;;  %vm3953_vm13 = vcmp.lt.s32.totalorder %v3952_v20, 0  ;;  %v1672_v57 = vadd.s32 1, %v5291_v58  ;;  %v5320_v0 = vshll.u32 %v1107_v33, 8 }
 0x1d0   : > { %v1926_v44 = vand.u32 2139095040, %v5307_v51  ;;  %v861_v62 = vsel %vm3953_vm13, 0, %v3952_v20  ;;  %v5323_v22 = vshrl.u32 %v1111_v13, 5  ;;  %vm6212_vm5 = vcmp.lt.s32.totalorder %v5145_v14, 0 }
 0x1d1   : > { %v1114_v28 = vsub.s32 32, %v1113_v29  ;;  %v1116_v63 = vshll.u32 %v6251_v30, %v1113_v29  ;;  %v862_v49 = vsub.s32 32, %v861_v62  ;;  %v866_v42 = vsub.s32 4294967266, %v861_v62 }
 0x1d2   : > { %v1673_v45 = vsel %vm1671_vm3, %v1672_v57, %v5291_v58  ;;  %v1119_v15 = vshll.u32 %v6253_v32, %v1113_v29  ;;  %v863_v7 = vshll.u32 %v5267_v1, %v861_v62  ;;  %v1122_v2 = vshll.u32 %v6254_v9, %v1113_v29 }
 0x1d3   : > { %v1674_v40 = vadd.s32 %v1673_v45, %v1669_v5  ;;  %v1117_v21 = vshrl.u32 %v6253_v32, %v1114_v28  ;;  %v1120_v35 = vshrl.u32 %v6254_v9, %v1114_v28  ;;  %v864_v52 = vshrl.u32 %v846_v25, %v862_v49 }
 0x1d4   : > { %v867_v33 = vadd.s32 127, %v866_v42  ;;  %v1123_v20 = vshrl.u32 %v6255_v59, %v1114_v28  ;;  %v1115_v41 = vshrl.u32 %v6251_v30, %v1114_v28  ;;  %v1125_v58 = vshll.u32 %v6255_v59, %v1113_v29 }
 0x1d5   : > { %v1675_v13 = vadd.s32 536870912, %v1674_v40  ;;  %v1118_v8 = vor.u32 %v1117_v21, %v1116_v63  ;;  %v5335_v57 = vpop.eup %4219  ;;  %v865_v1 = vor.u32 %v864_v52, %v863_v7  ;;  %v1121_v62 = vor.u32 %v1120_v35, %v1119_v15 }
 0x1d6   : > { %v868_v5 = vshll.u32 %v867_v33, 23  ;;  %v1126_v45 = vshrl.u32 %v6256_v61, %v1114_v28  ;;  %v5338_v37 = vpop.eup %4221  ;;  %v1128_v49 = vshll.u32 %v6256_v61, %v1113_v29  ;;  %v1129_v42 = vshrl.u32 %v6242_v38, %v1114_v28 }
 0x1d7   : > { %6289 = vst [vmem:[#allocation30_spill] sm:$0xff] %v5338_v37  ;;  %v1676_v25 = vshrl.u32 %v1675_v13, 30  ;;  %vm1131_vm6 = vcmp.lt.s32.totalorder %v5323_v22, 1  ;;  %v1124_v21 = vor.u32 %v1123_v20, %v1122_v2  ;;  %v1927_v56 = vshrl.u32 %v1926_v44, 23 }
 0x1d8   : > { %v869_v63 = vor.u32 4788187, %v868_v5  ;;  %v1127_v47 = vor.u32 %v1126_v45, %v1125_v58  ;;  %v6290_v7 = vand.u32 2147483647, %v5079_v54  ;;  %v6291_v15 = vmov 0 }
 0x1d9   : > { %v872_v35 = vcvt.s32.f32 %v865_v1  ;;  %v1677_v52 = vshll.u32 %v1676_v25, 30  ;;  %v1130_v33 = vor.u32 %v1129_v42, %v1128_v49  ;;  %vm1133_vm12 = vcmp.lt.s32.totalorder %v5323_v22, 3  ;;  %v5351_v29 = vpop.eup %4223 }
 0x1da   : > { %vm5346_vm2 = vcmp.le.f32.partialorder %v6290_v7, 0.7853982  ;;  %6294 = vst [vmem:[#allocation32_spill] sm:$0xff] %v5351_v29  ;;  %v870_v28 = vand.u32 2147483647, %v869_v63  ;;  %vm1132_vm3 = vcmp.lt.s32.totalorder %v5323_v22, 2  ;;  %v1139_v44 = vsel %vm1131_vm6, %v1118_v8, %v1121_v62 }
 0x1db   : > { %v6292_v15 = vsel %vm5346_vm2, 4294967295, %v6291_v15  ;;  %vm1134_vm13 = vcmp.lt.s32.totalorder %v5323_v22, 4  ;;  %v5358_v2 = vsub.s32 %v1674_v40, %v1677_v52  ;;  %v1135_v20 = vsel %vm1131_vm6, %v1115_v41, %v1118_v8 }
 0x1dc   : > { %6293 = vst [vmem:[#allocation31_spill] sm:$0xff] %v6292_v15  ;;  %v1136_v13 = vsel %vm1134_vm13, %v1124_v21, 2102212464  ;;  %v1140_v58 = vsel %vm1134_vm13, %v1127_v47, 920167782  ;;  %v873_v1 = vmul.f32 %v872_v35, %v870_v28  ;;  %v1143_v49 = vsel %vm1131_vm6, %v1121_v62, %v1124_v21 }
 0x1dd   : > { %v1137_v5 = vsel %vm1133_vm12, %v1121_v62, %v1136_v13  ;;  %v1141_v45 = vsel %vm1133_vm12, %v1124_v21, %v1140_v58  ;;  %v1680_v42 = vsub.s32 0, %v5358_v2  ;;  %v1144_v63 = vsel %vm1134_vm13, %v1130_v33, 1326507024 }
 0x1de   : > { %v1142_v40 = vsel %vm1132_vm3, %v1139_v44, %v1141_v45  ;;  %v6206_v8 = vand.u32 2147483647, %v5307_v51  ;;  %v874_v41 = vxor.u32 2147483648, %v873_v1  ;;  %v1145_v7 = vsel %vm1133_vm12, %v1127_v47, %v1144_v63 }
 0x1df   : > { %v5375_v35 = vmul.u32.u64.low %v5320_v0, %v1142_v40  ;;  %v5376_v52 = vmul.u32.u64.high %v5320_v0, %v1142_v40, %v5375_v35  ;;  %v3983_v28 = vmin.u32 %v1680_v42, %v5358_v2  ;;  %v1138_v62 = vsel %vm1132_vm3, %v1135_v20, %v1137_v5  ;;  %v5407_v40 = vpop.f32.mrf.mxu0 }
 0x1e0   : > { %v1146_v21 = vsel %vm1132_vm3, %v1143_v49, %v1145_v7  ;;  %v3994_v33 = vadd.s32 4294967169, %v1927_v56  ;;  %vm6295_vm6 = vcmp.lt.s32.totalorder %v5079_v54, 0  ;;  %v1700_v13 = vsub.s32 4, %v1676_v25 }
 0x1e1   : > { %v875_v44 = vsel %vm6295_vm6, %v874_v41, %v873_v1  ;;  %v5387_v47 = vmul.u32.u64.low %v5320_v0, %v1146_v21  ;;  %v5388_v58 = vmul.u32.u64.high %v5320_v0, %v1146_v21, %v5387_v47  ;;  %4225 = vcosq.f32 %v5315_v26  ;;  %vm6297_vm12 = vmmov %vm6295_vm6 }
 0x1e2   : > { %v6296_v45 = vsub.s32 4, %v5255_v24  ;;  %v1682_v22 = vclz %v3983_v28  ;;  %v1933_v5 = vadd.s32 1, %v3994_v33  ;;  %v5401_v56 = vsel %vm5346_vm2, %v5079_v54, %v875_v44 }
 0x1e3   : > { %v1154_v1 = vmul.u32 %v5320_v0, %v1138_v62  ;;  %v1157_v49 = vadd.s32 1, %v5376_v52  ;;  %v1930_v42 = vand.u32 8388607, %v6206_v8  ;;  %4227 = vsinq.f32 %v5315_v26 }
 0x1e4   : > { %v5396_v20 = vsel %vm6297_vm12, %v6296_v45, %v5255_v24  ;;  %v3984_v24 = vadd.s32 4294967294, %v1682_v22  ;;  %vm1934_vm3 = vcmp.gt.s32.totalorder %v1933_v5, 0  ;;  %v1670_v41 = vadd.s32 %v5290_v34, %v5288_v50 }
 0x1e5   : > { %6298 = vst [vmem:[#allocation33_spill] sm:$0xff] %v5396_v20  ;;  %v5415_v7 = vsel %vm6212_vm5, %v1700_v13, %v1676_v25  ;;  %vm1156_vm13 = vc.u32 %v5388_v58, %v5375_v35  ;;  %v1935_v0 = vsel %vm1934_vm3, %v1933_v5, 0  ;;  %4229 = vcosq.f32 %v5401_v56 }
 0x1e6   : > { %6299 = vst [vmem:[#allocation34_spill] sm:$0xff] %v5415_v7  ;;  %vm3985_vm6 = vcmp.lt.s32.totalorder %v3984_v24, 0  ;;  %v1158_v26 = vsel %vm1156_vm13, %v1157_v49, %v5376_v52  ;;  %v1937_v28 = vand.u32 31, %v1935_v0  ;;  %v1931_v33 = vor.u32 8388608, %v1930_v42 }
 0x1e7   : > { %v1685_v62 = vsel %vm3985_vm6, 0, %v3984_v24  ;;  %v1159_v21 = vadd.s32 %v1158_v26, %v1154_v1  ;;  %v999_v44 = vand.u32 2139095040, %v5407_v40  ;;  %v5422_v47 = vshrl.u32 %v1935_v0, 5 }
 0x1e8   : > { %v1686_v50 = vsub.s32 32, %v1685_v62  ;;  %v1690_v34 = vsub.s32 4294967266, %v1685_v62  ;;  %v1938_v25 = vsub.s32 32, %v1937_v28  ;;  %v1687_v13 = vshll.u32 %v5358_v2, %v1685_v62 }
 0x1e9   : > { %v1160_v45 = vadd.s32 536870912, %v1159_v21  ;;  %v1940_v22 = vshll.u32 %v6251_v30, %v1937_v28  ;;  %v1943_v5 = vshll.u32 %v6253_v32, %v1937_v28  ;;  %v1946_v1 = vshll.u32 %v6254_v9, %v1937_v28 }
 0x1ea   : > { %v1688_v8 = vshrl.u32 %v1670_v41, %v1686_v50  ;;  %v1691_v52 = vadd.s32 127, %v1690_v34  ;;  %v1941_v49 = vshrl.u32 %v6253_v32, %v1938_v25  ;;  %v1944_v24 = vshrl.u32 %v6254_v9, %v1938_v25 }
 0x1eb   : > { %v5429_v42 = vshrl.u32 %v1160_v45, 30  ;;  %v1947_v0 = vshrl.u32 %v6255_v59, %v1938_v25  ;;  %v1949_v26 = vshll.u32 %v6255_v59, %v1937_v28  ;;  %v1950_v63 = vshrl.u32 %v6256_v61, %v1938_v25 }
 0x1ec   : > { %v1689_v2 = vor.u32 %v1688_v8, %v1687_v13  ;;  %v1692_v62 = vshll.u32 %v1691_v52, 23  ;;  %v6300_v7 = vand.u32 2147483647, %v5407_v40  ;;  %v1939_v34 = vshrl.u32 %v6251_v30, %v1938_v25 }
 0x1ed   : > { %v1162_v50 = vshll.u32 %v5429_v42, 30  ;;  %v1942_v45 = vor.u32 %v1941_v49, %v1940_v22  ;;  %v5441_v54 = vshll.u32 %v1931_v33, 8  ;;  %v1945_v20 = vor.u32 %v1944_v24, %v1943_v5 }
 0x1ee   : > { %v5437_v41 = vand.u32 8388607, %v6300_v7  ;;  %v1693_v15 = vor.u32 4788187, %v1692_v62  ;;  %v1951_v37 = vor.u32 %v1950_v63, %v1949_v26  ;;  %v1952_v29 = vshll.u32 %v6256_v61, %v1937_v28  ;;  %v5444_v8 = vpop.eup %4225 }
 0x1ef   : > { %6301 = vst [vmem:[#allocation35_spill] sm:$0xff] %v5444_v8  ;;  %v5447_v13 = vsub.s32 %v1159_v21, %v1162_v50  ;;  %v1948_v7 = vor.u32 %v1947_v0, %v1946_v1  ;;  %v1953_v52 = vshrl.u32 %v6242_v38, %v1938_v25  ;;  %vm1955_vm3 = vcmp.lt.s32.totalorder %v5422_v47, 1 }
 0x1f0   : > { %v6302_v22 = vand.u32 2147483647, %v5145_v14  ;;  %v6303_v33 = vmov 0  ;;  %v1694_v63 = vand.u32 2147483647, %v1693_v15  ;;  %v1696_v5 = vcvt.s32.f32 %v1689_v2  ;;  %v5459_v28 = vpop.eup %4227 }
 0x1f1   : > { %vm1957_vm6 = vcmp.lt.s32.totalorder %v5422_v47, 3  ;;  %vm1958_vm5 = vcmp.lt.s32.totalorder %v5422_v47, 4  ;;  %6306 = vst [vmem:[#allocation37_spill] sm:$0xff] %v5459_v28  ;;  %v1165_v21 = vsub.s32 0, %v5447_v13  ;;  %v1954_v49 = vor.u32 %v1953_v52, %v1952_v29 }
 0x1f2   : > { %vm5453_vm13 = vcmp.le.f32.partialorder %v6302_v22, 0.7853982  ;;  %vm1956_vm12 = vcmp.lt.s32.totalorder %v5422_v47, 2  ;;  %v1960_v25 = vsel %vm1958_vm5, %v1948_v7, 2102212464  ;;  %v1697_v1 = vmul.f32 %v1696_v5, %v1694_v63  ;;  %v5469_v26 = vpop.eup %4229 }
 0x1f3   : > { %v6304_v33 = vsel %vm5453_vm13, 4294967295, %v6303_v33  ;;  %v1963_v24 = vsel %vm1955_vm3, %v1942_v45, %v1945_v20  ;;  %v1964_v15 = vsel %vm1958_vm5, %v1951_v37, 920167782  ;;  %v1000_v0 = vshrl.u32 %v999_v44, 23  ;;  %6307 = vst [vmem:[#allocation38_spill] sm:$0xff] %v5469_v26 }
 0x1f4   : > { %6305 = vst [vmem:[#allocation36_spill] sm:$0xff] %v6304_v33  ;;  %v3963_v2 = vmin.u32 %v1165_v21, %v5447_v13  ;;  %v1959_v29 = vsel %vm1955_vm3, %v1939_v34, %v1942_v45  ;;  %v1965_v62 = vsel %vm1957_vm6, %v1948_v7, %v1964_v15  ;;  %v1967_v50 = vsel %vm1955_vm3, %v1945_v20, %v1948_v7 }
 0x1f5   : > { %v1698_v52 = vxor.u32 2147483648, %v1697_v1  ;;  %v1961_v22 = vsel %vm1957_vm6, %v1945_v20, %v1960_v25  ;;  %v1966_v44 = vsel %vm1956_vm12, %v1963_v24, %v1965_v62  ;;  %v1968_v63 = vsel %vm1958_vm5, %v1954_v49, 1326507024  ;;  %v5502_v62 = vpop.f32.mrf.mxu1 }
 0x1f6   : > { %v1167_v5 = vclz %v3963_v2  ;;  %v1969_v34 = vsel %vm1957_vm6, %v1951_v37, %v1968_v63  ;;  %v5487_v45 = vmul.u32.u64.low %v5441_v54, %v1966_v44  ;;  %v5488_v21 = vmul.u32.u64.high %v5441_v54, %v1966_v44, %v5487_v45 }
 0x1f7   : > { %vm6308_vm3 = vcmp.lt.s32.totalorder %v5145_v14, 0  ;;  %v1185_v20 = vsub.s32 4, %v5429_v42  ;;  %v1970_v25 = vsel %vm1956_vm12, %v1967_v50, %v1969_v34  ;;  %v3958_v24 = vadd.s32 4294967169, %v1000_v0 }
 0x1f8   : > { %v1699_v7 = vsel %vm6308_vm3, %v1698_v52, %v1697_v1  ;;  %v3964_v15 = vadd.s32 4294967294, %v1167_v5  ;;  %v1962_v49 = vsel %vm1956_vm12, %v1959_v29, %v1961_v22  ;;  %4231 = vsinq.f32 %v5401_v56 }
 0x1f9   : > { %v5499_v37 = vmul.u32.u64.low %v5441_v54, %v1970_v25  ;;  %v5500_v2 = vmul.u32.u64.high %v5441_v54, %v1970_v25, %v5499_v37  ;;  %v1155_v1 = vadd.s32 %v5375_v35, %v5388_v58  ;;  %v1006_v52 = vadd.s32 1, %v3958_v24 }
 0x1fa   : > { %v6213_v44 = vand.u32 2147483647, %v5502_v62  ;;  %v1702_v0 = vsel %vm5453_vm13, %v5145_v14, %v1699_v7  ;;  %vm3965_vm5 = vcmp.lt.s32.totalorder %v3964_v15, 0  ;;  %v1981_v47 = vadd.s32 1, %v5488_v21 }
 0x1fb   : > { %v1004_v29 = vor.u32 8388608, %v5437_v41  ;;  %v1170_v50 = vsel %vm3965_vm5, 0, %v3964_v15  ;;  %vm6309_vm12 = vcmp.lt.s32.totalorder %v5212_v48, 0  ;;  %v1978_v35 = vmul.u32 %v5441_v54, %v1962_v49 }
 0x1fc   : > { %v5516_v56 = vsel %vm6309_vm12, %v1185_v20, %v5429_v42  ;;  %vm1007_vm6 = vcmp.gt.s32.totalorder %v1006_v52, 0  ;;  %v1171_v58 = vsub.s32 32, %v1170_v50  ;;  %v1175_v22 = vsub.s32 4294967266, %v1170_v50 }
 0x1fd   : > { %6310 = vst [vmem:[#allocation39_spill] sm:$0xff] %v5516_v56  ;;  %v1823_v63 = vand.u32 2139095040, %v5502_v62  ;;  %v5522_v5 = vand.u32 8388607, %v6213_v44  ;;  %4233 = vcosq.f32 %v1702_v0  ;;  %v1172_v41 = vshll.u32 %v5447_v13, %v1170_v50 }
 0x1fe   : > { %vm1980_vm3 = vc.u32 %v5500_v2, %v5487_v45  ;;  %v1008_v34 = vsel %vm1007_vm6, %v1006_v52, 0  ;;  %v1173_v42 = vshrl.u32 %v1155_v1, %v1171_v58  ;;  %v1176_v7 = vadd.s32 127, %v1175_v22 }
 0x1ff   : > { %v1982_v54 = vsel %vm1980_vm3, %v1981_v47, %v5488_v21  ;;  %v5528_v20 = vshrl.u32 %v1008_v34, 5  ;;  %4235 = vsinq.f32 %v1702_v0  ;;  %v1010_v24 = vand.u32 31, %v1008_v34 }
 0x200   : > { %v1983_v25 = vadd.s32 %v1982_v54, %v1978_v35  ;;  %v5530_v15 = vshll.u32 %v1004_v29, 8  ;;  %v1174_v49 = vor.u32 %v1173_v42, %v1172_v41  ;;  %v1177_v37 = vshll.u32 %v1176_v7, 23 }
 0x201   : > { %v1824_v44 = vshrl.u32 %v1823_v63, 23  ;;  %v1011_v56 = vsub.s32 32, %v1010_v24  ;;  %v1013_v52 = vshll.u32 %v6251_v30, %v1010_v24  ;;  %v1016_v1 = vshll.u32 %v6253_v32, %v1010_v24 }
 0x202   : > { %v1984_v50 = vadd.s32 536870912, %v1983_v25  ;;  %v1178_v58 = vor.u32 4788187, %v1177_v37  ;;  %v1019_v21 = vshll.u32 %v6254_v9, %v1010_v24  ;;  %v1022_v0 = vshll.u32 %v6255_v59, %v1010_v24 }
 0x203   : > { %v6311_v47 = vand.u32 2147483647, %v5212_v48  ;;  %v1181_v35 = vcvt.s32.f32 %v1174_v49  ;;  %v1014_v63 = vshrl.u32 %v6253_v32, %v1011_v56  ;;  %v1017_v41 = vshrl.u32 %v6254_v9, %v1011_v56 }
 0x204   : > { %v1985_v22 = vshrl.u32 %v1984_v50, 30  ;;  %v1179_v34 = vand.u32 2147483647, %v1178_v58  ;;  %v1020_v42 = vshrl.u32 %v6255_v59, %v1011_v56  ;;  %v1023_v7 = vshrl.u32 %v6256_v61, %v1011_v56 }
 0x205   : > { %vm5540_vm12 = vcmp.le.f32.partialorder %v6311_v47, 0.7853982  ;;  %v1025_v54 = vshll.u32 %v6256_v61, %v1010_v24  ;;  %v1012_v47 = vshrl.u32 %v6251_v30, %v1011_v56  ;;  %v1015_v13 = vor.u32 %v1014_v63, %v1013_v52  ;;  %v5551_v49 = vpop.eup %4231 }
 0x206   : > { %v1986_v37 = vshll.u32 %v1985_v22, 30  ;;  %v1018_v14 = vor.u32 %v1017_v41, %v1016_v1  ;;  %v1182_v50 = vmul.f32 %v1181_v35, %v1179_v34  ;;  %v1021_v33 = vor.u32 %v1020_v42, %v1019_v21 }
 0x207   : > { %v1024_v8 = vor.u32 %v1023_v7, %v1022_v0  ;;  %v1026_v58 = vshrl.u32 %v6242_v38, %v1011_v56  ;;  %vm1031_vm6 = vcmp.lt.s32.totalorder %v5528_v20, 4  ;;  %v3990_v26 = vadd.s32 4294967169, %v1824_v44 }
 0x208   : > { %v5554_v28 = vsub.s32 %v1983_v25, %v1986_v37  ;;  %v1183_v24 = vxor.u32 2147483648, %v1182_v50  ;;  %v1033_v52 = vsel %vm1031_vm6, %v1021_v33, 2102212464  ;;  %vm6314_vm13 = vcmp.lt.s32.totalorder %v5528_v20, 1 }
 0x209   : > { %v1027_v16 = vor.u32 %v1026_v58, %v1025_v54  ;;  %v1032_v21 = vsel %vm6314_vm13, %v1012_v47, %v1015_v13  ;;  %vm6315_vm15 = vmmov %vm6314_vm13  ;;  %v1037_v25 = vsel %vm1031_vm6, %v1024_v8, 920167782  ;;  %vm6316_vm3 = vcmp.lt.s32.totalorder %v5212_v48, 0 }
 0x20a   : > { %v1989_v1 = vsub.s32 0, %v5554_v28  ;;  %v1036_v56 = vsel %vm6315_vm15, %v1015_v13, %v1018_v14  ;;  %v5568_v0 = vpop.eup %4233  ;;  %v1184_v44 = vsel %vm6316_vm3, %v1183_v24, %v1182_v50  ;;  %vm6317_vm5 = vcmp.lt.s32.totalorder %v5528_v20, 3  ;;  %vm6319_vm4 = vmmov %vm6314_vm13 }
 0x20b   : > { %v1034_v35 = vsel %vm6317_vm5, %v1018_v14, %v1033_v52  ;;  %vm6318_vm2 = vmmov %vm6317_vm5  ;;  %v1040_v41 = vsel %vm6319_vm4, %v1018_v14, %v1021_v33  ;;  %v2009_v13 = vsub.s32 4, %v1985_v22  ;;  %vm6320_vm15 = vcmp.lt.s32.totalorder %v5528_v20, 2 }
 0x20c   : > { %v1038_v63 = vsel %vm6318_vm2, %v1021_v33, %v1037_v25  ;;  %v3995_v34 = vmin.u32 %v1989_v1, %v5554_v28  ;;  %v1041_v7 = vsel %vm1031_vm6, %v1027_v16, 1326507024  ;;  %v5583_v54 = vpop.eup %4235  ;;  %v1187_v37 = vsel %vm5540_vm12, %v5212_v48, %v1184_v44  ;;  %vm6321_vm4 = vmmov %vm6320_vm15 }
 0x20d   : > { %v1039_v42 = vsel %vm6320_vm15, %v1036_v56, %v1038_v63  ;;  %v1042_v47 = vsel %vm6318_vm2, %v1024_v8, %v1041_v7  ;;  %v1979_v50 = vadd.s32 %v5487_v45, %v5500_v2  ;;  %v1035_v16 = vsel %vm6321_vm4, %v1032_v21, %v1034_v35  ;;  %vm6322_vm13 = vmmov %vm6321_vm4 }
 0x20e   : > { %v5591_v14 = vmul.u32.u64.low %v5530_v15, %v1039_v42  ;;  %v5592_v33 = vmul.u32.u64.high %v5530_v15, %v1039_v42, %v5591_v14  ;;  %v1991_v58 = vclz %v3995_v34  ;;  %v1043_v24 = vsel %vm6322_vm13, %v1040_v41, %v1042_v47 }
 0x20f   : > { %v5601_v52 = vmul.u32.u64.low %v5530_v15, %v1043_v24  ;;  %v5602_v1 = vmul.u32.u64.high %v5530_v15, %v1043_v24, %v5601_v52  ;;  %v1830_v56 = vadd.s32 1, %v3990_v26  ;;  %v1391_v8 = vsub.s32 4, %v4514_v3 }
 0x210   : > { %4237 = vcosq.f32 %v1187_v37  ;;  %v3996_v25 = vadd.s32 4294967294, %v1991_v58  ;;  %vm6323_vm5 = vcmp.lt.s32.totalorder %v5307_v51, 0  ;;  %v6324_v45 = vor.u32 8388608, %v5522_v5 }
 0x211   : > { %v5607_v44 = vsel %vm6323_vm5, %v2009_v13, %v1985_v22  ;;  %4239 = vsinq.f32 %v1187_v37  ;;  %v1051_v20 = vmul.u32 %v5530_v15, %v1035_v16  ;;  %v1054_v21 = vadd.s32 1, %v5592_v33 }
 0x212   : > { %v5611_v2 = vshll.u32 %v6324_v45, 8  ;;  %vm1831_vm6 = vcmp.gt.s32.totalorder %v1830_v56, 0  ;;  %vm3997_vm3 = vcmp.lt.s32.totalorder %v3996_v25, 0  ;;  %vm6325_vm15 = vcmp.lt.s32.totalorder %v4371_v18, 0 }
 0x213   : > { %v1832_v26 = vsel %vm1831_vm6, %v1830_v56, 0  ;;  %v1392_v35 = vsel %vm6325_vm15, %v1391_v8, %v4514_v3  ;;  %v1994_v22 = vsel %vm3997_vm3, 0, %v3996_v25  ;;  %vm1053_vm2 = vc.u32 %v5602_v1, %v5591_v14 }
 0x214   : > { %v5620_v5 = vshrl.u32 %v1832_v26, 5  ;;  %v1995_v34 = vsub.s32 32, %v1994_v22  ;;  %v1996_v15 = vshll.u32 %v5554_v28, %v1994_v22  ;;  %v1999_v13 = vsub.s32 4294967266, %v1994_v22 }
 0x215   : > { %vm6224_vm4 = vcmp.lt.s32.totalorder %v5407_v40, 0  ;;  %v1055_v42 = vsel %vm1053_vm2, %v1054_v21, %v5592_v33  ;;  %v1834_v37 = vand.u32 31, %v1832_v26  ;;  %v5628_v3 = vsel %vm4654_vm1, 0, %v1392_v35 }
 0x216   : > { %v1056_v7 = vadd.s32 %v1055_v42, %v1051_v20  ;;  %v567_v47 = vsub.s32 4, %v4481_v27  ;;  %v1997_v58 = vshrl.u32 %v1979_v50, %v1995_v34  ;;  %v2000_v16 = vadd.s32 127, %v1999_v13 }
 0x217   : > { %v5632_v24 = vadd.s32 %v5591_v14, %v5602_v1  ;;  %vm1852_vm13 = vcmp.lt.s32.totalorder %v5620_v5, 1  ;;  %v6326_v28 = vand.u32 2147483647, %v5407_v40  ;;  %v1835_v56 = vsub.s32 32, %v1834_v37 }
 0x218   : > { %v1057_v33 = vadd.s32 536870912, %v1056_v7  ;;  %v1837_v53 = vshll.u32 %v6251_v30, %v1834_v37  ;;  %v1840_v8 = vshll.u32 %v6253_v32, %v1834_v37  ;;  %vm1853_vm1 = vcmp.lt.s32.totalorder %v5620_v5, 2 }
 0x219   : > { %vm5637_vm5 = vcmp.le.f32.partialorder %v6326_v28, 0.7853982  ;;  %v1998_v50 = vor.u32 %v1997_v58, %v1996_v15  ;;  %v2001_v25 = vshll.u32 %v2000_v16, 23  ;;  %v1843_v14 = vshll.u32 %v6254_v9, %v1834_v37 }
 0x21a   : > { %v1846_v1 = vshll.u32 %v6255_v59, %v1834_v37  ;;  %v1058_v45 = vshrl.u32 %v1057_v33, 30  ;;  %v1836_v20 = vshrl.u32 %v6251_v30, %v1835_v56  ;;  %v1838_v21 = vshrl.u32 %v6253_v32, %v1835_v56 }
 0x21b   : > { %v1841_v26 = vshrl.u32 %v6254_v9, %v1835_v56  ;;  %v2002_v35 = vor.u32 4788187, %v2001_v25  ;;  %v2005_v22 = vcvt.s32.f32 %v1998_v50  ;;  %v1844_v34 = vshrl.u32 %v6255_v59, %v1835_v56 }
 0x21c   : > { %v1847_v13 = vshrl.u32 %v6256_v61, %v1835_v56  ;;  %v6329_v15 = vand.u32 2147483647, %v5307_v51  ;;  %v1059_v58 = vshll.u32 %v1058_v45, 30  ;;  %v1082_v16 = vsub.s32 4, %v1058_v45 }
 0x21d   : > { %v1839_v28 = vor.u32 %v1838_v21, %v1837_v53  ;;  %v1842_v30 = vor.u32 %v1841_v26, %v1840_v8  ;;  %v2003_v33 = vand.u32 2147483647, %v2002_v35  ;;  %v1845_v32 = vor.u32 %v1844_v34, %v1843_v14  ;;  %v5658_v50 = vpop.eup %4237 }
 0x21e   : > { %vm5653_vm6 = vcmp.le.f32.partialorder %v6329_v15, 0.7853982  ;;  %v1848_v41 = vor.u32 %v1847_v13, %v1846_v1  ;;  %v1849_v9 = vshll.u32 %v6256_v61, %v1834_v37  ;;  %v5660_v59 = vsub.s32 %v1056_v7, %v1059_v58  ;;  %v5666_v63 = vpop.eup %4239 }
 0x21f   : > { %v1083_v25 = vsel %vm6224_vm4, %v1082_v16, %v1058_v45  ;;  %v1850_v15 = vshrl.u32 %v6242_v38, %v1835_v56  ;;  %vm1855_vm3 = vcmp.lt.s32.totalorder %v5620_v5, 4  ;;  %v2006_v53 = vmul.f32 %v2005_v22, %v2003_v33 }
 0x220   : > { %vm1854_vm15 = vcmp.lt.s32.totalorder %v5620_v5, 3  ;;  %v1856_v8 = vsel %vm1852_vm13, %v1836_v20, %v1839_v28  ;;  %v1857_v61 = vsel %vm1855_vm3, %v1845_v32, 2102212464  ;;  %v1062_v7 = vsub.s32 0, %v5660_v59 }
 0x221   : > { %v1851_v37 = vor.u32 %v1850_v15, %v1849_v9  ;;  %v1858_v14 = vsel %vm1854_vm15, %v1842_v30, %v1857_v61  ;;  %v1860_v38 = vsel %vm1852_vm13, %v1839_v28, %v1842_v30  ;;  %v2007_v56 = vxor.u32 2147483648, %v2006_v53 }
 0x222   : > { %v5680_v1 = vsel %vm5637_vm5, 0, %v1083_v25  ;;  %v1861_v45 = vsel %vm1855_vm3, %v1848_v41, 920167782  ;;  %v1864_v20 = vsel %vm1852_vm13, %v1842_v30, %v1845_v32  ;;  %v3959_v21 = vmin.u32 %v1062_v7, %v5660_v59 }
 0x223   : > { %v1859_v26 = vsel %vm1853_vm1, %v1856_v8, %v1858_v14  ;;  %v1862_v35 = vsel %vm1854_vm15, %v1845_v32, %v1861_v45  ;;  %v1865_v22 = vsel %vm1855_vm3, %v1851_v37, 1326507024  ;;  %vm6332_vm4 = vcmp.lt.s32.totalorder %v5307_v51, 0 }
 0x224   : > { %v2008_v34 = vsel %vm6332_vm4, %v2007_v56, %v2006_v53  ;;  %v1863_v13 = vsel %vm1853_vm1, %v1860_v38, %v1862_v35  ;;  %v1866_v58 = vsel %vm1854_vm15, %v1848_v41, %v1865_v22  ;;  %v1398_v16 = vand.u32 3, %v5628_v3 }
 0x225   : > { %v1064_v28 = vclz %v3959_v21  ;;  %v5702_v30 = vadd.s32 3, %v5680_v1  ;;  %v1867_v33 = vsel %vm1853_vm1, %v1864_v20, %v1866_v58  ;;  %vm6333_vm4 = vcmp.lt.s32.totalorder %v4369_v17, 0 }
 0x226   : > { %v568_v32 = vsel %vm6333_vm4, %v567_v47, %v4481_v27  ;;  %v2011_v9 = vsel %vm5653_vm6, %v5307_v51, %v2008_v34  ;;  %v5715_v41 = vmul.u32.u64.low %v5611_v2, %v1867_v33  ;;  %v5716_v25 = vmul.u32.u64.high %v5611_v2, %v1867_v33, %v5715_v41 }
 0x227   : > { %v1875_v15 = vmul.u32 %v5611_v2, %v1859_v26  ;;  %v3960_v53 = vadd.s32 4294967294, %v1064_v28  ;;  %v5720_v5 = vmul.u32.u64.low %v5611_v2, %v1863_v13  ;;  %v5721_v8 = vmul.u32.u64.high %v5611_v2, %v1863_v13, %v5720_v5 }
 0x228   : > { %vm1399_vm13 = vcmp.lt.s32.totalorder %v1398_v16, 2  ;;  %vm1400_vm1 = vcmp.eq.s32.totalorder %v1398_v16, 0  ;;  %vm1403_vm3 = vcmp.eq.s32.totalorder %v1398_v16, 2  ;;  %v570_v27 = vsel %vm4612_vm14, 0, %v568_v32 }
 0x229   : > { %v577_v47 = vxor.u32 2147483648, %v4664_v10  ;;  %vm3961_vm15 = vcmp.lt.s32.totalorder %v3960_v53, 0  ;;  %v6334_v61 = vxor.u32 2147483648, %v4800_v12  ;;  %v6335_v37 = vxor.u32 2147483648, %v4794_v19 }
 0x22a   : > { %vm573_vm4 = vweird.f32 %v4369_v17  ;;  %v574_v2 = vand.u32 3, %v570_v27  ;;  %4241 = vcosq.f32 %v2011_v9  ;;  %v1067_v38 = vsel %vm3961_vm15, 0, %v3960_v53 }
 0x22b   : > { %v1402_v7 = vsel %vm1400_vm1, %v4794_v19, %v6334_v61  ;;  %v1405_v14 = vsel %vm1403_vm3, %v6335_v37, %v4800_v12  ;;  %vm1877_vm2 = vc.u32 %v5716_v25, %v5720_v5  ;;  %4243 = vsinq.f32 %v2011_v9 }
 0x22c   : > { %v1406_v6 = vsel %vm1399_vm13, %v1402_v7, %v1405_v14  ;;  %v1068_v56 = vsub.s32 32, %v1067_v38  ;;  %v1072_v45 = vsub.s32 4294967266, %v1067_v38  ;;  %v1878_v20 = vadd.s32 1, %v5721_v8 }
 0x22d   : > { %v1069_v21 = vshll.u32 %v5660_v59, %v1067_v38  ;;  %v6336_v26 = vand.u32 2147483647, %v5502_v62  ;;  %vm6339_vm3 = vweird.f32 %v4371_v18  ;;  %vm575_vm15 = vcmp.lt.s32.totalorder %v574_v2, 2 }
 0x22e   : > { %v1407_v22 = vsel %vm6339_vm3, nan, %v1406_v6  ;;  %vm576_vm13 = vcmp.eq.s32.totalorder %v574_v2, 0  ;;  %v1070_v34 = vshrl.u32 %v5632_v24, %v1068_v56  ;;  %v1073_v13 = vadd.s32 127, %v1072_v45 }
 0x22f   : > { %vm5741_vm1 = vcmp.le.f32.partialorder %v6336_v26, 0.7853982  ;;  %v1879_v58 = vsel %vm1877_vm2, %v1878_v20, %v5721_v8  ;;  %2060 = vrot.lane.b32.xlu1 %v1407_v22, %s4267_s21  ;;  %v578_v59 = vsel %vm576_vm13, %v4661_v31, %v577_v47  ;;  %v580_v28 = vxor.u32 2147483648, %v4661_v31 }
 0x230   : > { %v1880_v16 = vadd.s32 %v1879_v58, %v1875_v15  ;;  %v2304_v33 = vadd.s32 3, %v570_v27  ;;  %v5755_v32 = vsel %vm4708_vm10, 0, %v4764_v46  ;;  %v1071_v9 = vor.u32 %v1070_v34, %v1069_v21 }
 0x231   : > { %v1074_v41 = vshll.u32 %v1073_v13, 23  ;;  %vm579_vm3 = vcmp.eq.s32.totalorder %v574_v2, 2  ;;  %v471_v24 = vand.u32 3, %v5755_v32  ;;  %v474_v7 = vxor.u32 2147483648, %v4879_v55 }
 0x232   : > { %v1881_v53 = vadd.s32 536870912, %v1880_v16  ;;  %v581_v8 = vsel %vm579_vm3, %v580_v28, %v4664_v10  ;;  %v2305_v61 = vand.u32 3, %v2304_v33  ;;  %v1078_v37 = vcvt.s32.f32 %v1071_v9 }
 0x233   : > { %v1075_v15 = vor.u32 4788187, %v1074_v41  ;;  %v582_v27 = vsel %vm575_vm15, %v578_v59, %v581_v8  ;;  %vm473_vm14 = vcmp.eq.s32.totalorder %v471_v24, 0  ;;  %vm476_vm15 = vcmp.eq.s32.totalorder %v471_v24, 2 }
 0x234   : > { %v1882_v14 = vshrl.u32 %v1881_v53, 30  ;;  %v583_v11 = vsel %vm573_vm4, nan, %v582_v27  ;;  %vm2306_vm10 = vcmp.lt.s32.totalorder %v2305_v61, 2  ;;  %vm2307_vm13 = vcmp.eq.s32.totalorder %v2305_v61, 0 }
 0x235   : > { %v1076_v46 = vand.u32 2147483647, %v1075_v15  ;;  %2044 = vrot.lane.b32.xlu0 %v583_v11, %s4267_s21  ;;  %v2309_v38 = vsel %vm2307_vm13, %v4661_v31, %v577_v47  ;;  %vm2310_vm3 = vcmp.eq.s32.totalorder %v2305_v61, 2  ;;  %v475_v2 = vsel %vm473_vm14, %v4803_v36, %v474_v7  ;;  %v6344_v61 = vld [vmem:[#allocation2_spill] sm:$0xff] }
 0x236   : > { %v1883_v6 = vshll.u32 %v1882_v14, 30  ;;  %v1906_v56 = vsub.s32 4, %v1882_v14  ;;  %v2312_v45 = vsel %vm2310_vm3, %v580_v28, %v4664_v10  ;;  %v477_v26 = vxor.u32 2147483648, %v4803_v36 }
 0x237   : > { %v1079_v20 = vmul.f32 %v1078_v37, %v1076_v46  ;;  %v2313_v21 = vsel %vm2306_vm10, %v2309_v38, %v2312_v45  ;;  %vm6340_vm2 = vcmp.lt.s32.totalorder %v5502_v62, 0  ;;  %v3136_v34 = vadd.s32 3, %v5628_v3  ;;  %v5777_v10 = vpop.eup %4241  ;;  %v6347_v46 = vld [vmem:[#allocation11_spill] sm:$0xff] }
 0x238   : > { %v5770_v22 = vsub.s32 %v1880_v16, %v1883_v6  ;;  %v1907_v31 = vsel %vm6340_vm2, %v1906_v56, %v1882_v14  ;;  %v2314_v47 = vsel %vm573_vm4, nan, %v2313_v21  ;;  %v478_v59 = vsel %vm476_vm15, %v477_v26, %v4879_v55  ;;  %v5790_v16 = vpop.eup %4243  ;;  %v6346_v14 = vld [vmem:[#allocation13_spill] sm:$0xff] }
 0x239   : > { %v1080_v13 = vxor.u32 2147483648, %v1079_v20  ;;  %v5781_v58 = vsel %vm5741_vm1, 0, %v1907_v31  ;;  %3789 = vrot.lane.b32.xlu1 %v2314_v47, %s4268_s22  ;;  %v1291_v17 = vsel %vm4807_vm9, 0, %v4931_v39  ;;  %vm470_vm4 = vweird.f32 %v4377_v23 }
 0x23a   : > { %v1886_v3 = vsub.s32 0, %v5770_v22  ;;  %vm6341_vm14 = vcmp.lt.s32.totalorder %v471_v24, 2  ;;  %v3137_v33 = vand.u32 3, %v3136_v34  ;;  %vm6342_vm2 = vcmp.lt.s32.totalorder %v5407_v40, 0  ;;  %v6351_v34 = vld [vmem:[#allocation16_spill] sm:$0xff] }
 0x23b   : > { %v479_v28 = vsel %vm6341_vm14, %v475_v2, %v478_v59  ;;  %v1081_v9 = vsel %vm6342_vm2, %v1080_v13, %v1079_v20  ;;  %v1876_v41 = vadd.s32 %v5720_v5, %v5716_v25  ;;  %v1295_v43 = vand.u32 3, %v1291_v17  ;;  %v6349_v2 = vld [vmem:[#allocation9_spill] sm:$0xff] }
 0x23c   : > { %v480_v53 = vsel %vm470_vm4, nan, %v479_v28  ;;  %v5804_v39 = vsel %vm5637_vm5, %v5407_v40, %v1081_v9  ;;  %v3991_v8 = vmin.u32 %v1886_v3, %v5770_v22  ;;  %v5808_v24 = vadd.s32 3, %v5781_v58  ;;  %v6352_v3 = vld [vmem:[#allocation3_spill] sm:$0xff] }
 0x23d   : > { %2042 = vrot.lane.b32.xlu0 %v480_v53, %s4267_s21  ;;  %vm3139_vm9 = vcmp.eq.s32.totalorder %v3137_v33, 0  ;;  %vm3138_vm10 = vcmp.lt.s32.totalorder %v3137_v33, 2  ;;  %v6343_v25 = vxor.u32 2147483648, %v4800_v12  ;;  %vm3142_vm13 = vcmp.eq.s32.totalorder %v3137_v33, 2  ;;  %v6353_v53 = vld [vmem:[#allocation14_spill] sm:$0xff] }
 0x23e   : > { %vm1294_vm3 = vweird.f32 %v6344_v61  ;;  %4245 = vcosq.f32 %v5804_v39  ;;  %v1888_v52 = vclz %v3991_v8  ;;  %v6345_v15 = vxor.u32 2147483648, %v4794_v19 }
 0x23f   : > { %v3141_v5 = vsel %vm3139_vm9, %v4794_v19, %v6343_v25  ;;  %vm1297_vm5 = vcmp.eq.s32.totalorder %v1295_v43, 0  ;;  %v1298_v11 = vxor.u32 2147483648, %v6346_v14  ;;  %vm1300_vm15 = vcmp.eq.s32.totalorder %v1295_v43, 2 }
 0x240   : > { %v3144_v37 = vsel %vm3142_vm13, %v6345_v15, %v4800_v12  ;;  %v1301_v38 = vxor.u32 2147483648, %v6347_v46  ;;  %v3992_v6 = vadd.s32 4294967294, %v1888_v52  ;;  %vm6348_vm14 = vweird.f32 %v4371_v18 }
 0x241   : > { %v3145_v27 = vsel %vm3138_vm10, %v3141_v5, %v3144_v37  ;;  %v2200_v45 = vadd.s32 3, %v5755_v32  ;;  %v5827_v21 = vsel %vm4867_vm7, 0, %v6349_v2  ;;  %vm1296_vm2 = vcmp.lt.s32.totalorder %v1295_v43, 2 }
 0x242   : > { %v3146_v56 = vsel %vm6348_vm14, nan, %v3145_v27  ;;  %v1299_v19 = vsel %vm1297_vm5, %v6347_v46, %v1298_v11  ;;  %v1302_v12 = vsel %vm1300_vm15, %v1301_v38, %v6346_v14  ;;  %v780_v31 = vand.u32 3, %v5827_v21 }
 0x243   : > { %3805 = vrot.lane.b32.xlu1 %v3146_v56, %s4268_s22  ;;  %vm3993_vm9 = vcmp.lt.s32.totalorder %v3992_v6, 0  ;;  %v1303_v47 = vsel %vm1296_vm2, %v1299_v19, %v1302_v12  ;;  %v2201_v18 = vand.u32 3, %v2200_v45  ;;  %v783_v13 = vxor.u32 2147483648, %v6351_v34  ;;  %v6356_v19 = vld [vmem:[#allocation22_spill] sm:$0xff] }
 0x244   : > { %v1891_v32 = vsel %vm3993_vm9, 0, %v3992_v6  ;;  %v1304_v59 = vsel %vm1294_vm3, nan, %v1303_v47  ;;  %vm779_vm7 = vweird.f32 %v6352_v3  ;;  %vm781_vm10 = vcmp.lt.s32.totalorder %v780_v31, 2  ;;  %v6369_v3 = vld [vmem:[#allocation5_spill] sm:$0xff] }
 0x245   : > { %v1892_v28 = vsub.s32 32, %v1891_v32  ;;  %v1893_v33 = vshll.u32 %v5770_v22, %v1891_v32  ;;  %v1896_v9 = vsub.s32 4294967266, %v1891_v32  ;;  %2058 = vrot.lane.b32.xlu0 %v1304_v59, %s4267_s21  ;;  %vm782_vm13 = vcmp.eq.s32.totalorder %v780_v31, 0 }
 0x246   : > { %vm2202_vm5 = vcmp.lt.s32.totalorder %v2201_v18, 2  ;;  %vm2203_vm15 = vcmp.eq.s32.totalorder %v2201_v18, 0  ;;  %vm2206_vm14 = vcmp.eq.s32.totalorder %v2201_v18, 2  ;;  %v784_v43 = vsel %vm782_vm13, %v6353_v53, %v783_v13 }
 0x247   : > { %v1894_v8 = vshrl.u32 %v1876_v41, %v1892_v28  ;;  %v1897_v25 = vadd.s32 127, %v1896_v9  ;;  %v2205_v5 = vsel %vm2203_vm15, %v4803_v36, %v474_v7  ;;  %v2208_v22 = vsel %vm2206_vm14, %v477_v26, %v4879_v55  ;;  %v6355_v26 = vld [vmem:[#allocation23_spill] sm:$0xff]  ;;  %v6357_v28 = vld [vmem:[#allocation20_spill] sm:$0xff] }
 0x248   : > { %v2209_v52 = vsel %vm2202_vm5, %v2205_v5, %v2208_v22  ;;  %v786_v15 = vxor.u32 2147483648, %v6353_v53  ;;  %v3032_v37 = vadd.s32 3, %v1291_v17  ;;  %v1600_v6 = vsel %vm4975_vm0, 0, %v5132_v4 }
 0x249   : > { %v1895_v56 = vor.u32 %v1894_v8, %v1893_v33  ;;  %v1898_v45 = vshll.u32 %v1897_v25, 23  ;;  %v2210_v41 = vsel %vm470_vm4, nan, %v2209_v52  ;;  %vm785_vm2 = vcmp.eq.s32.totalorder %v780_v31, 2  ;;  %v6364_v33 = vld [vmem:[#allocation25_spill] sm:$0xff] }
 0x24a   : > { %3787 = vrot.lane.b32.xlu0 %v2210_v41, %s4268_s22  ;;  %v787_v36 = vsel %vm785_vm2, %v786_v15, %v6351_v34  ;;  %v3033_v55 = vand.u32 3, %v3032_v37  ;;  %v1604_v7 = vand.u32 3, %v1600_v6  ;;  %v1607_v17 = vxor.u32 2147483648, %v6355_v26 }
 0x24b   : > { %v1899_v2 = vor.u32 4788187, %v1898_v45  ;;  %v1902_v20 = vcvt.s32.f32 %v1895_v56  ;;  %v788_v4 = vsel %vm781_vm10, %v784_v43, %v787_v36  ;;  %v1610_v12 = vxor.u32 2147483648, %v6356_v19  ;;  %v5861_v47 = vpop.eup %4245 }
 0x24c   : > { %v789_v23 = vsel %vm779_vm7, nan, %v788_v4  ;;  %vm3034_vm0 = vcmp.lt.s32.totalorder %v3033_v55, 2  ;;  %vm3035_vm4 = vcmp.eq.s32.totalorder %v3033_v55, 0  ;;  %vm3038_vm9 = vcmp.eq.s32.totalorder %v3033_v55, 2  ;;  %v6361_v55 = vld [vmem:[#allocation6_spill] sm:$0xff] }
 0x24d   : > { %v1900_v18 = vand.u32 2147483647, %v1899_v2  ;;  %2048 = vrot.lane.b32.xlu1 %v789_v23, %s4267_s21  ;;  %v3037_v32 = vsel %vm3035_vm4, %v6347_v46, %v1298_v11  ;;  %v3040_v59 = vsel %vm3038_vm9, %v1301_v38, %v6346_v14  ;;  %vm1605_vm13 = vcmp.lt.s32.totalorder %v1604_v7, 2  ;;  %v6359_v11 = vld [vmem:[#allocation4_spill] sm:$0xff] }
 0x24e   : > { %v3041_v31 = vsel %vm3034_vm0, %v3037_v32, %v3040_v59  ;;  %vm1606_vm10 = vcmp.eq.s32.totalorder %v1604_v7, 0  ;;  %vm1609_vm5 = vcmp.eq.s32.totalorder %v1604_v7, 2  ;;  %v1497_v9 = vsel %vm5108_vm11, 0, %v6357_v28 }
 0x24f   : > { %v1903_v43 = vmul.f32 %v1902_v20, %v1900_v18  ;;  %v3042_v8 = vsel %vm1294_vm3, nan, %v3041_v31  ;;  %v1608_v25 = vsel %vm1606_vm10, %v6356_v19, %v1607_v17  ;;  %v1611_v5 = vsel %vm1609_vm5, %v1610_v12, %v6355_v26  ;;  %v6362_v20 = vld [vmem:[#allocation19_spill] sm:$0xff] }
 0x250   : > { %3803 = vrot.lane.b32.xlu0 %v3042_v8, %s4268_s22  ;;  %vm1603_vm15 = vweird.f32 %v6359_v11  ;;  %v1612_v14 = vsel %vm1605_vm13, %v1608_v25, %v1611_v5  ;;  %v1501_v46 = vand.u32 3, %v1497_v9  ;;  %v1504_v38 = vxor.u32 2147483648, %v5335_v57  ;;  %v6365_v8 = vld [vmem:[#allocation24_spill] sm:$0xff]  ;;  %v6367_v5 = vld [vmem:[#allocation26_spill] sm:$0xff] }
 0x251   : > { %v1904_v22 = vxor.u32 2147483648, %v1903_v43  ;;  %v1613_v52 = vsel %vm1603_vm15, nan, %v1612_v14  ;;  %v1507_v37 = vxor.u32 2147483648, %v5253_v60  ;;  %v2512_v61 = vadd.s32 3, %v5827_v21  ;;  %v6366_v25 = vld [vmem:[#allocation28_spill] sm:$0xff] }
 0x252   : > { %2064 = vrot.lane.b32.xlu1 %v1613_v52, %s4267_s21  ;;  %vm1502_vm11 = vcmp.lt.s32.totalorder %v1501_v46, 2  ;;  %vm1503_vm3 = vcmp.eq.s32.totalorder %v1501_v46, 0  ;;  %vm1506_vm14 = vcmp.eq.s32.totalorder %v1501_v46, 2  ;;  %v3344_v27 = vadd.s32 3, %v1600_v6  ;;  %v6370_v46 = vld [vmem:[#allocation32_spill] sm:$0xff]  ;;  %v6371_v52 = vld [vmem:[#allocation7_spill] sm:$0xff] }
 0x253   : > { %vm6360_vm2 = vcmp.lt.s32.totalorder %v5502_v62, 0  ;;  %v1505_v45 = vsel %vm1503_vm3, %v5253_v60, %v1504_v38  ;;  %v1508_v41 = vsel %vm1506_vm14, %v1507_v37, %v5335_v57  ;;  %v2513_v36 = vand.u32 3, %v2512_v61 }
 0x254   : > { %v1905_v56 = vsel %vm6360_vm2, %v1904_v22, %v1903_v43  ;;  %vm1500_vm0 = vweird.f32 %v6361_v55  ;;  %v1509_v7 = vsel %vm1502_vm11, %v1505_v45, %v1508_v41  ;;  %v3345_v6 = vand.u32 3, %v3344_v27 }
 0x255   : > { %v1908_v21 = vsel %vm5741_vm1, %v5502_v62, %v1905_v56  ;;  %4247 = vsinq.f32 %v5804_v39  ;;  %v1510_v2 = vsel %vm1500_vm0, nan, %v1509_v7  ;;  %vm2515_vm4 = vcmp.eq.s32.totalorder %v2513_v36, 0 }
 0x256   : > { %v673_v23 = vsel %vm5056_vm8, 0, %v6362_v20  ;;  %4249 = vcosq.f32 %v1908_v21  ;;  %2062 = vrot.lane.b32.xlu0 %v1510_v2, %s4267_s21  ;;  %vm2514_vm9 = vcmp.lt.s32.totalorder %v2513_v36, 2  ;;  %v2517_v35 = vsel %vm2515_vm4, %v6353_v53, %v783_v13  ;;  %v6372_v2 = vld [vmem:[#allocation30_spill] sm:$0xff] }
 0x257   : > { %vm2518_vm1 = vcmp.eq.s32.totalorder %v2513_v36, 2  ;;  %4251 = vsinq.f32 %v1908_v21  ;;  %vm3347_vm13 = vcmp.eq.s32.totalorder %v3345_v6, 0  ;;  %vm3350_vm10 = vcmp.eq.s32.totalorder %v3345_v6, 2 }
 0x258   : > { %v2520_v39 = vsel %vm2518_vm1, %v786_v15, %v6351_v34  ;;  %vm3346_vm5 = vcmp.lt.s32.totalorder %v3345_v6, 2  ;;  %v3349_v32 = vsel %vm3347_vm13, %v6356_v19, %v1607_v17  ;;  %v3352_v59 = vsel %vm3350_vm10, %v1610_v12, %v6355_v26 }
 0x259   : > { %v2521_v18 = vsel %vm2514_vm9, %v2517_v35, %v2520_v39  ;;  %v3353_v28 = vsel %vm3346_vm5, %v3349_v32, %v3352_v59  ;;  %v680_v13 = vxor.u32 2147483648, %v6364_v33  ;;  %v2408_v43 = vadd.s32 3, %v673_v23  ;;  %v6376_v32 = vld [vmem:[#allocation38_spill] sm:$0xff] }
 0x25a   : > { %v2522_v31 = vsel %vm779_vm7, nan, %v2521_v18  ;;  %v683_v53 = vxor.u32 2147483648, %v6365_v8  ;;  %v3240_v34 = vadd.s32 3, %v1497_v9  ;;  %v677_v15 = vand.u32 3, %v673_v23 }
 0x25b   : > { %3793 = vrot.lane.b32.xlu1 %v2522_v31, %s4268_s22  ;;  %vm6368_vm8 = vnez %v6367_v5  ;;  %v3354_v26 = vsel %vm1603_vm15, nan, %v3353_v28  ;;  %vm676_vm7 = vweird.f32 %v6369_v3  ;;  %v2409_v17 = vand.u32 3, %v2408_v43  ;;  %v6379_v43 = vld [vmem:[#allocation27_spill] sm:$0xff] }
 0x25c   : > { %v5918_v14 = vsel %vm6368_vm8, 0, %v6366_v25  ;;  %v3241_v12 = vand.u32 3, %v3240_v34  ;;  %vm678_vm11 = vcmp.lt.s32.totalorder %v677_v15, 2  ;;  %vm679_vm3 = vcmp.eq.s32.totalorder %v677_v15, 0 }
 0x25d   : > { %v986_v19 = vand.u32 3, %v5918_v14  ;;  %v989_v22 = vxor.u32 2147483648, %v6370_v46  ;;  %vm2411_vm14 = vcmp.eq.s32.totalorder %v2409_v17, 0  ;;  %vm2414_vm2 = vcmp.eq.s32.totalorder %v2409_v17, 2 }
 0x25e   : > { %v681_v9 = vsel %vm679_vm3, %v6365_v8, %v680_v13  ;;  %vm682_vm4 = vcmp.eq.s32.totalorder %v677_v15, 2  ;;  %vm985_vm9 = vweird.f32 %v6371_v52  ;;  %vm2410_vm15 = vcmp.lt.s32.totalorder %v2409_v17, 2  ;;  %v6382_v17 = vld [vmem:[#allocation10_spill] sm:$0xff] }
 0x25f   : > { %3809 = vrot.lane.b32.xlu1 %v3354_v26, %s4268_s22  ;;  %v2413_v11 = vsel %vm2411_vm14, %v6365_v8, %v680_v13  ;;  %v2416_v61 = vsel %vm2414_vm2, %v683_v53, %v6364_v33  ;;  %vm3243_vm1 = vcmp.eq.s32.totalorder %v3241_v12, 0  ;;  %vm3246_vm13 = vcmp.eq.s32.totalorder %v3241_v12, 2  ;;  %v6378_v13 = vld [vmem:[#allocation29_spill] sm:$0xff] }
 0x260   : > { %v2417_v27 = vsel %vm2410_vm15, %v2413_v11, %v2416_v61  ;;  %v3245_v56 = vsel %vm3243_vm1, %v5253_v60, %v1504_v38  ;;  %v684_v45 = vsel %vm682_vm4, %v683_v53, %v6364_v33  ;;  %vm3242_vm10 = vcmp.lt.s32.totalorder %v3241_v12, 2  ;;  %v6377_v33 = vld [vmem:[#allocation17_spill] sm:$0xff]  ;;  %v6383_v12 = vld [vmem:[#allocation35_spill] sm:$0xff]  ;;  %v6385_v11 = vld [vmem:[#allocation36_spill] sm:$0xff] }
 0x261   : > { %v2418_v41 = vsel %vm676_vm7, nan, %v2417_v27  ;;  %v3248_v36 = vsel %vm3246_vm13, %v1507_v37, %v5335_v57  ;;  %v685_v21 = vsel %vm678_vm11, %v681_v9, %v684_v45  ;;  %vm987_vm5 = vcmp.lt.s32.totalorder %v986_v19, 2  ;;  %v6373_v57 = vld [vmem:[#allocation33_spill] sm:$0xff]  ;;  %v6374_v37 = vld [vmem:[#allocation31_spill] sm:$0xff] }
 0x262   : > { %3791 = vrot.lane.b32.xlu0 %v2418_v41, %s4268_s22  ;;  %v3249_v7 = vsel %vm3242_vm10, %v3245_v56, %v3248_v36  ;;  %v686_v6 = vsel %vm676_vm7, nan, %v685_v21  ;;  %vm988_vm8 = vcmp.eq.s32.totalorder %v986_v19, 0  ;;  %v5943_v38 = vpop.eup %4247  ;;  %vm991_vm3 = vcmp.eq.s32.totalorder %v986_v19, 2  ;;  %v6381_v53 = vld [vmem:[#allocation37_spill] sm:$0xff]  ;;  %v6384_v19 = vld [vmem:[#allocation34_spill] sm:$0xff] }
 0x263   : > { %2046 = vrot.lane.b32.xlu1 %v686_v6, %s4267_s21  ;;  %v990_v20 = vsel %vm988_vm8, %v6372_v2, %v989_v22  ;;  %v992_v60 = vxor.u32 2147483648, %v6372_v2  ;;  %vm6375_vm11 = vnez %v6374_v37  ;;  %v5953_v23 = vpop.eup %4249  ;;  %v3250_v35 = vsel %vm1500_vm0, nan, %v3249_v7 }
 0x264   : > { %v879_v4 = vsel %vm6375_vm11, 0, %v6373_v57  ;;  %v886_v18 = vxor.u32 2147483648, %v5551_v49  ;;  %v889_v59 = vxor.u32 2147483648, %v6376_v32  ;;  %v5959_v31 = vpop.eup %4251  ;;  %vm882_vm7 = vweird.f32 %v6377_v33 }
 0x265   : > { %v883_v39 = vand.u32 3, %v879_v4  ;;  %v993_v28 = vsel %vm991_vm3, %v992_v60, %v6370_v46  ;;  %vm6380_vm14 = vnez %v6379_v43  ;;  %v1813_v34 = vxor.u32 2147483648, %v6381_v53 }
 0x266   : > { %v1806_v8 = vsel %vm6380_vm14, 0, %v6378_v13  ;;  %3807 = vrot.lane.b32.xlu0 %v3250_v35, %s4268_s22  ;;  %v994_v55 = vsel %vm987_vm5, %v990_v20, %v993_v28  ;;  %vm1809_vm15 = vweird.f32 %v6382_v17  ;;  %v1816_v9 = vxor.u32 2147483648, %v6383_v12  ;;  %v6387_v13 = vld [vmem:[#allocation21_spill] sm:$0xff] }
 0x267   : > { %vm884_vm0 = vcmp.lt.s32.totalorder %v883_v39, 2  ;;  %vm885_vm2 = vcmp.eq.s32.totalorder %v883_v39, 0  ;;  %vm888_vm4 = vcmp.eq.s32.totalorder %v883_v39, 2  ;;  %v995_v15 = vsel %vm985_vm9, nan, %v994_v55 }
 0x268   : > { %v887_v25 = vsel %vm885_vm2, %v6376_v32, %v886_v18  ;;  %v890_v5 = vsel %vm888_vm4, %v889_v59, %v5551_v49  ;;  %v1810_v26 = vand.u32 3, %v1806_v8  ;;  %2052 = vrot.lane.b32.xlu1 %v995_v15, %s4267_s21  ;;  %vm6386_vm1 = vnez %v6385_v11  ;;  %v6388_v15 = vld [vmem:[#allocation39_spill] sm:$0xff] }
 0x269   : > { %v891_v3 = vsel %vm884_vm0, %v887_v25, %v890_v5  ;;  %v1703_v61 = vsel %vm6386_vm1, 0, %v6384_v19  ;;  %v1710_v36 = vxor.u32 2147483648, %v5583_v54  ;;  %v1713_v7 = vxor.u32 2147483648, %v5568_v0 }
 0x26a   : > { %v892_v27 = vsel %vm882_vm7, nan, %v891_v3  ;;  %vm1811_vm13 = vcmp.lt.s32.totalorder %v1810_v26, 2  ;;  %vm1812_vm10 = vcmp.eq.s32.totalorder %v1810_v26, 0  ;;  %vm1815_vm5 = vcmp.eq.s32.totalorder %v1810_v26, 2 }
 0x26b   : > { %2050 = vrot.lane.b32.xlu0 %v892_v27, %s4267_s21  ;;  %v1814_v56 = vsel %vm1812_vm10, %v6383_v12, %v1813_v34  ;;  %v1817_v45 = vsel %vm1815_vm5, %v1816_v9, %v6381_v53  ;;  %v1707_v41 = vand.u32 3, %v1703_v61  ;;  %v2720_v6 = vadd.s32 3, %v5918_v14 }
 0x26c   : > { %v1818_v21 = vsel %vm1811_vm13, %v1814_v56, %v1817_v45  ;;  %v2616_v20 = vadd.s32 3, %v879_v4  ;;  %vm1706_vm14 = vweird.f32 %v6387_v13  ;;  %v3552_v55 = vadd.s32 3, %v1806_v8 }
 0x26d   : > { %v1819_v57 = vsel %vm1809_vm15, nan, %v1818_v21  ;;  %vm1708_vm8 = vcmp.lt.s32.totalorder %v1707_v41, 2  ;;  %vm1709_vm3 = vcmp.eq.s32.totalorder %v1707_v41, 0  ;;  %vm1712_vm11 = vcmp.eq.s32.totalorder %v1707_v41, 2 }
 0x26e   : > { %2068 = vrot.lane.b32.xlu1 %v1819_v57, %s4267_s21  ;;  %v1711_v37 = vsel %vm1709_vm3, %v5568_v0, %v1710_v36  ;;  %v1714_v35 = vsel %vm1712_vm11, %v1713_v7, %v5583_v54  ;;  %v2721_v39 = vand.u32 3, %v2720_v6  ;;  %v2617_v28 = vand.u32 3, %v2616_v20 }
 0x26f   : > { %v1715_v43 = vsel %vm1708_vm8, %v1711_v37, %v1714_v35  ;;  %v3448_v14 = vadd.s32 3, %v1703_v61  ;;  %v6000_v25 = vsel %vm5540_vm12, 0, %v6388_v15  ;;  %v3553_v19 = vand.u32 3, %v3552_v55 }
 0x270   : > { %v1716_v4 = vsel %vm1706_vm14, nan, %v1715_v43  ;;  %vm2723_vm0 = vcmp.eq.s32.totalorder %v2721_v39, 0  ;;  %vm2726_vm2 = vcmp.eq.s32.totalorder %v2721_v39, 2  ;;  %vm2722_vm4 = vcmp.lt.s32.totalorder %v2721_v39, 2 }
 0x271   : > { %2066 = vrot.lane.b32.xlu0 %v1716_v4, %s4267_s21  ;;  %v2725_v5 = vsel %vm2723_vm0, %v6372_v2, %v989_v22  ;;  %v2728_v8 = vsel %vm2726_vm2, %v992_v60, %v6370_v46  ;;  %vm2619_vm1 = vcmp.eq.s32.totalorder %v2617_v28, 0  ;;  %vm2622_vm13 = vcmp.eq.s32.totalorder %v2617_v28, 2 }
 0x272   : > { %v2729_v26 = vsel %vm2722_vm4, %v2725_v5, %v2728_v8  ;;  %v2621_v3 = vsel %vm2619_vm1, %v6376_v32, %v886_v18  ;;  %vm2618_vm12 = vcmp.lt.s32.totalorder %v2617_v28, 2  ;;  %v2624_v11 = vsel %vm2622_vm13, %v889_v59, %v5551_v49 }
 0x273   : > { %v2730_v29 = vsel %vm985_vm9, nan, %v2729_v26  ;;  %v3449_v61 = vand.u32 3, %v3448_v14  ;;  %v2625_v27 = vsel %vm2618_vm12, %v2621_v3, %v2624_v11  ;;  %vm3554_vm10 = vcmp.lt.s32.totalorder %v3553_v19, 2 }
 0x274   : > { %3797 = vrot.lane.b32.xlu1 %v2730_v29, %s4268_s22  ;;  %vm3555_vm5 = vcmp.eq.s32.totalorder %v3553_v19, 0  ;;  %vm3558_vm8 = vcmp.eq.s32.totalorder %v3553_v19, 2  ;;  %vm1191_vm3 = vweird.f32 %v5212_v48  ;;  %v2626_v46 = vsel %vm882_vm7, nan, %v2625_v27 }
 0x275   : > { %v3557_v22 = vsel %vm3555_vm5, %v6383_v12, %v1813_v34  ;;  %v3560_v52 = vsel %vm3558_vm8, %v1816_v9, %v6381_v53  ;;  %vm3450_vm9 = vcmp.lt.s32.totalorder %v3449_v61, 2  ;;  %3795 = vrot.lane.b32.xlu0 %v2626_v46, %s4268_s22  ;;  %vm3451_vm11 = vcmp.eq.s32.totalorder %v3449_v61, 0 }
 0x276   : > { %v3561_v49 = vsel %vm3554_vm10, %v3557_v22, %v3560_v52  ;;  %vm3454_vm0 = vcmp.eq.s32.totalorder %v3449_v61, 2  ;;  %v1192_v2 = vand.u32 3, %v6000_v25  ;;  %v3453_v18 = vsel %vm3451_vm11, %v5568_v0, %v1710_v36 }
 0x277   : > { %v3562_v60 = vsel %vm1809_vm15, nan, %v3561_v49  ;;  %v3456_v32 = vsel %vm3454_vm0, %v1713_v7, %v5583_v54  ;;  %v1195_v59 = vxor.u32 2147483648, %v5666_v63  ;;  %v1198_v17 = vxor.u32 2147483648, %v5658_v50 }
 0x278   : > { %3813 = vrot.lane.b32.xlu1 %v3562_v60, %s4268_s22  ;;  %v3457_v33 = vsel %vm3450_vm9, %v3453_v18, %v3456_v32  ;;  %vm1193_vm7 = vcmp.lt.s32.totalorder %v1192_v2, 2  ;;  %vm1194_vm2 = vcmp.eq.s32.totalorder %v1192_v2, 0  ;;  %vm1197_vm4 = vcmp.eq.s32.totalorder %v1192_v2, 2 }
 0x279   : > { %v3458_v53 = vsel %vm1706_vm14, nan, %v3457_v33  ;;  %v1196_v34 = vsel %vm1194_vm2, %v5658_v50, %v1195_v59  ;;  %vm1088_vm15 = vweird.f32 %v5407_v40  ;;  %v1089_v0 = vand.u32 3, %v5680_v1 }
 0x27a   : > { %3811 = vrot.lane.b32.xlu0 %v3458_v53, %s4268_s22  ;;  %v1092_v54 = vxor.u32 2147483648, %v5943_v38  ;;  %v1095_v12 = vxor.u32 2147483648, %v5861_v47  ;;  %v2012_v9 = vsel %vm5653_vm6, 0, %v5607_v44  ;;  %v1199_v56 = vsel %vm1197_vm4, %v1198_v17, %v5666_v63 }
 0x27b   : > { %vm2015_vm14 = vweird.f32 %v5307_v51  ;;  %v2016_v45 = vand.u32 3, %v2012_v9  ;;  %v2019_v41 = vxor.u32 2147483648, %v5790_v16  ;;  %v1200_v36 = vsel %vm1193_vm7, %v1196_v34, %v1199_v56 }
 0x27c   : > { %vm1090_vm1 = vcmp.lt.s32.totalorder %v1089_v0, 2  ;;  %vm1091_vm13 = vcmp.eq.s32.totalorder %v1089_v0, 0  ;;  %vm1094_vm12 = vcmp.eq.s32.totalorder %v1089_v0, 2  ;;  %v1201_v1 = vsel %vm1191_vm3, nan, %v1200_v36 }
 0x27d   : > { %v1093_v21 = vsel %vm1091_vm13, %v5861_v47, %v1092_v54  ;;  %v1096_v42 = vsel %vm1094_vm12, %v1095_v12, %v5943_v38  ;;  %vm2017_vm6 = vcmp.lt.s32.totalorder %v2016_v45, 2  ;;  %2056 = vrot.lane.b32.xlu1 %v1201_v1, %s4267_s21  ;;  %vm2018_vm10 = vcmp.eq.s32.totalorder %v2016_v45, 0 }
 0x27e   : > { %v1097_v44 = vsel %vm1090_vm1, %v1093_v21, %v1096_v42  ;;  %vm2021_vm5 = vcmp.eq.s32.totalorder %v2016_v45, 2  ;;  %v2022_v7 = vxor.u32 2147483648, %v5777_v10  ;;  %v2020_v20 = vsel %vm2018_vm10, %v5777_v10, %v2019_v41 }
 0x27f   : > { %v1098_v6 = vsel %vm1088_vm15, nan, %v1097_v44  ;;  %vm1912_vm8 = vweird.f32 %v5502_v62  ;;  %v1913_v57 = vand.u32 3, %v5781_v58  ;;  %v1916_v35 = vxor.u32 2147483648, %v5959_v31 }
 0x280   : > { %2054 = vrot.lane.b32.xlu0 %v1098_v6, %s4267_s21  ;;  %v2023_v37 = vsel %vm2021_vm5, %v2022_v7, %v5790_v16  ;;  %v1919_v39 = vxor.u32 2147483648, %v5953_v23  ;;  %v2928_v28 = vadd.s32 3, %v6000_v25  ;;  %v2825_v15 = vand.u32 3, %v5702_v30 }
 0x281   : > { %v2024_v13 = vsel %vm2017_vm6, %v2020_v20, %v2023_v37  ;;  %vm1914_vm9 = vcmp.lt.s32.totalorder %v1913_v57, 2  ;;  %vm1915_vm11 = vcmp.eq.s32.totalorder %v1913_v57, 0  ;;  %vm1918_vm0 = vcmp.eq.s32.totalorder %v1913_v57, 2 }
 0x282   : > { %v2025_v43 = vsel %vm2015_vm14, nan, %v2024_v13  ;;  %v1917_v55 = vsel %vm1915_vm11, %v5953_v23, %v1916_v35  ;;  %v1920_v58 = vsel %vm1918_vm0, %v1919_v39, %v5959_v31  ;;  %v2929_v14 = vand.u32 3, %v2928_v28 }
 0x283   : > { %2072 = vrot.lane.b32.xlu1 %v2025_v43, %s4267_s21  ;;  %v1921_v4 = vsel %vm1914_vm9, %v1917_v55, %v1920_v58  ;;  %v3760_v5 = vadd.s32 3, %v2012_v9  ;;  %v3657_v25 = vand.u32 3, %v5808_v24  ;;  %vm2827_vm1 = vcmp.eq.s32.totalorder %v2825_v15, 0 }
 0x284   : > { %v1922_v8 = vsel %vm1912_vm8, nan, %v1921_v4  ;;  %vm2931_vm7 = vcmp.eq.s32.totalorder %v2929_v14, 0  ;;  %vm2934_vm2 = vcmp.eq.s32.totalorder %v2929_v14, 2  ;;  %vm2930_vm4 = vcmp.lt.s32.totalorder %v2929_v14, 2 }
 0x285   : > { %2070 = vrot.lane.b32.xlu0 %v1922_v8, %s4267_s21  ;;  %v2933_v26 = vsel %vm2931_vm7, %v5658_v50, %v1195_v59  ;;  %v2936_v3 = vsel %vm2934_vm2, %v1198_v17, %v5666_v63  ;;  %v2829_v29 = vsel %vm2827_vm1, %v5861_v47, %v1092_v54  ;;  %vm2830_vm13 = vcmp.eq.s32.totalorder %v2825_v15, 2 }
 0x286   : > { %v2937_v19 = vsel %vm2930_vm4, %v2933_v26, %v2936_v3  ;;  %v3761_v30 = vand.u32 3, %v3760_v5  ;;  %vm2826_vm12 = vcmp.lt.s32.totalorder %v2825_v15, 2  ;;  %v2832_v11 = vsel %vm2830_vm13, %v1095_v12, %v5943_v38 }
 0x287   : > { %v2938_v24 = vsel %vm1191_vm3, nan, %v2937_v19  ;;  %vm3659_vm6 = vcmp.eq.s32.totalorder %v3657_v25, 0  ;;  %v2833_v61 = vsel %vm2826_vm12, %v2829_v29, %v2832_v11  ;;  %vm3662_vm3 = vcmp.eq.s32.totalorder %v3657_v25, 2 }
 0x288   : > { %3801 = vrot.lane.b32.xlu1 %v2938_v24, %s4268_s22  ;;  %vm3762_vm10 = vcmp.lt.s32.totalorder %v3761_v30, 2  ;;  %vm3763_vm5 = vcmp.eq.s32.totalorder %v3761_v30, 0  ;;  %vm3766_vm9 = vcmp.eq.s32.totalorder %v3761_v30, 2  ;;  %v2834_v63 = vsel %vm1088_vm15, nan, %v2833_v61 }
 0x289   : > { %v3765_v50 = vsel %vm3763_vm5, %v5777_v10, %v2019_v41  ;;  %v3768_v47 = vsel %vm3766_vm9, %v2022_v7, %v5790_v16  ;;  %v3661_v48 = vsel %vm3659_vm6, %v5953_v23, %v1916_v35  ;;  %3799 = vrot.lane.b32.xlu0 %v2834_v63, %s4268_s22  ;;  %vm3658_vm11 = vcmp.lt.s32.totalorder %v3657_v25, 2 }
 0x28a   : > { %v3769_v38 = vsel %vm3762_vm10, %v3765_v50, %v3768_v47  ;;  %v3664_v40 = vsel %vm3662_vm3, %v1919_v39, %v5959_v31  ;;  %vm2090_vm15 = vcmask 293920  }
 0x28b   : > { %v3770_v27 = vsel %vm2015_vm14, nan, %v3769_v38  ;;  %v3665_v10 = vsel %vm3658_vm11, %v3661_v48, %v3664_v40  ;;  %vm3835_vm14 = vcmask 556320  }
 0x28c   : > { %3817 = vrot.lane.b32.xlu1 %v3770_v27, %s4268_s22  ;;  %v3666_v16 = vsel %vm1912_vm8, nan, %v3665_v10 }
 0x28d   : > { %3815 = vrot.lane.b32.xlu0 %v3666_v16, %s4268_s22 }
 0x2a1   : > { %v2061_v23 = vpop.permute.xlu1 %2060 }
 0x2a2   : > { %2100 = vst.msk [vmem:[%s4303_s20 + $0x48] sm:$0xff] %vm2090_vm15, %v2061_v23 }
 0x2a7   : > { %v2045_v51 = vpop.permute.xlu0 %2044 }
 0x2a8   : > { %2092 = vst.msk [vmem:[%s4303_s20 + $0x8] sm:$0xff] %vm2090_vm15, %v2045_v51 }
 0x2ab   : > { %v3790_v31 = vpop.permute.xlu1 %3789 }
 0x2ac   : > { %3837 = vst.msk [vmem:[%s4303_s20 + $0x8] sm:$0xff] %vm3835_vm14, %v3790_v31 }
 0x2af   : > { %v2043_v62 = vpop.permute.xlu0 %2042 }
 0x2b0   : > { %2091 = vst.msk [vmem:[%s4303_s20] sm:$0xff] %vm2090_vm15, %v2043_v62 }
 0x2b5   : > { %v3806_v46 = vpop.permute.xlu1 %3805 }
 0x2b6   : > { %3845 = vst.msk [vmem:[%s4303_s20 + $0x48] sm:$0xff] %vm3835_vm14, %v3806_v46 }
 0x2b7   : > { %v2059_v22 = vpop.permute.xlu0 %2058 }
 0x2b8   : > { %2099 = vst.msk [vmem:[%s4303_s20 + $0x40] sm:$0xff] %vm2090_vm15, %v2059_v22 }
 0x2bc   : > { %v3788_v52 = vpop.permute.xlu0 %3787 }
 0x2bd   : > { %3836 = vst.msk [vmem:[%s4303_s20] sm:$0xff] %vm3835_vm14, %v3788_v52 }
 0x2bf   : > { %v2049_v49 = vpop.permute.xlu1 %2048 }
 0x2c0   : > { %2094 = vst.msk [vmem:[%s4303_s20 + $0x18] sm:$0xff] %vm2090_vm15, %v2049_v49 }
 0x2c2   : > { %v3804_v2 = vpop.permute.xlu0 %3803 }
 0x2c3   : > { %3844 = vst.msk [vmem:[%s4303_s20 + $0x40] sm:$0xff] %vm3835_vm14, %v3804_v2 }
 0x2c4   : > { %v2065_v60 = vpop.permute.xlu1 %2064 }
 0x2c5   : > { %2102 = vst.msk [vmem:[%s4303_s20 + $0x58] sm:$0xff] %vm2090_vm15, %v2065_v60 }
 0x2c8   : > { %v2063_v18 = vpop.permute.xlu0 %2062 }
 0x2c9   : > { %2101 = vst.msk [vmem:[%s4303_s20 + $0x50] sm:$0xff] %vm2090_vm15, %v2063_v18 }
 0x2cd   : > { %v3794_v32 = vpop.permute.xlu1 %3793 }
 0x2ce   : > { %3839 = vst.msk [vmem:[%s4303_s20 + $0x18] sm:$0xff] %vm3835_vm14, %v3794_v32 }
 0x2d1   : > { %v3810_v59 = vpop.permute.xlu1 %3809 }
 0x2d2   : > { %3847 = vst.msk [vmem:[%s4303_s20 + $0x58] sm:$0xff] %vm3835_vm14, %v3810_v59 }
 0x2d4   : > { %v3792_v33 = vpop.permute.xlu0 %3791 }
 0x2d5   : > { %v2047_v53 = vpop.permute.xlu1 %2046 }
 0x2d6   : > { %2093 = vst.msk [vmem:[%s4303_s20 + $0x10] sm:$0xff] %vm2090_vm15, %v2047_v53 }
 0x2d7   : > { %3838 = vst.msk [vmem:[%s4303_s20 + $0x10] sm:$0xff] %vm3835_vm14, %v3792_v33 }
 0x2d8   : > { %v3808_v34 = vpop.permute.xlu0 %3807 }
 0x2d9   : > { %3846 = vst.msk [vmem:[%s4303_s20 + $0x50] sm:$0xff] %vm3835_vm14, %v3808_v34 }
 0x2da   : > { %v2053_v17 = vpop.permute.xlu1 %2052 }
 0x2db   : > { %2096 = vst.msk [vmem:[%s4303_s20 + $0x28] sm:$0xff] %vm2090_vm15, %v2053_v17 }
 0x2dd   : > { %v2051_v0 = vpop.permute.xlu0 %2050 }
 0x2de   : > { %2095 = vst.msk [vmem:[%s4303_s20 + $0x20] sm:$0xff] %vm2090_vm15, %v2051_v0 }
 0x2e0   : > { %v2069_v54 = vpop.permute.xlu1 %2068 }
 0x2e1   : > { %2104 = vst.msk [vmem:[%s4303_s20 + $0x68] sm:$0xff] %vm2090_vm15, %v2069_v54 }
 0x2e3   : > { %v2067_v12 = vpop.permute.xlu0 %2066 }
 0x2e4   : > { %2103 = vst.msk [vmem:[%s4303_s20 + $0x60] sm:$0xff] %vm2090_vm15, %v2067_v12 }
 0x2e6   : > { %v3798_v9 = vpop.permute.xlu1 %3797 }
 0x2e7   : > { %3841 = vst.msk [vmem:[%s4303_s20 + $0x28] sm:$0xff] %vm3835_vm14, %v3798_v9  ;;  %v3796_v56 = vpop.permute.xlu0 %3795 }
 0x2e8   : > { %3840 = vst.msk [vmem:[%s4303_s20 + $0x20] sm:$0xff] %vm3835_vm14, %v3796_v56 }
 0x2ea   : > { %v3814_v45 = vpop.permute.xlu1 %3813 }
 0x2eb   : > { %3849 = vst.msk [vmem:[%s4303_s20 + $0x68] sm:$0xff] %vm3835_vm14, %v3814_v45 }
 0x2ec   : > { %v3812_v41 = vpop.permute.xlu0 %3811 }
 0x2ed   : > { %3848 = vst.msk [vmem:[%s4303_s20 + $0x60] sm:$0xff] %vm3835_vm14, %v3812_v41 }
 0x2ef   : > { %v2057_v36 = vpop.permute.xlu1 %2056 }
 0x2f0   : > { %2098 = vst.msk [vmem:[%s4303_s20 + $0x38] sm:$0xff] %vm2090_vm15, %v2057_v36 }
 0x2f2   : > { %v2055_v1 = vpop.permute.xlu0 %2054 }
 0x2f3   : > { %2097 = vst.msk [vmem:[%s4303_s20 + $0x30] sm:$0xff] %vm2090_vm15, %v2055_v1 }
 0x2f5   : > { %v2073_v21 = vpop.permute.xlu1 %2072 }
 0x2f6   : > { %2106 = vst.msk [vmem:[%s4303_s20 + $0x78] sm:$0xff] %vm2090_vm15, %v2073_v21 }
 0x2f7   : > { %v2071_v42 = vpop.permute.xlu0 %2070 }
 0x2f8   : > { %2105 = vst.msk [vmem:[%s4303_s20 + $0x70] sm:$0xff] %vm2090_vm15, %v2071_v42 }
 0x2fa   : > { %v3802_v44 = vpop.permute.xlu1 %3801 }
 0x2fb   : > { %3843 = vst.msk [vmem:[%s4303_s20 + $0x38] sm:$0xff] %vm3835_vm14, %v3802_v44  ;;  %v3800_v7 = vpop.permute.xlu0 %3799 }
 0x2fc   : > { %3842 = vst.msk [vmem:[%s4303_s20 + $0x30] sm:$0xff] %vm3835_vm14, %v3800_v7 }
 0x2fe   : > { %v3818_v6 = vpop.permute.xlu1 %3817 }
 0x2ff   : > { %3851 = vst.msk [vmem:[%s4303_s20 + $0x78] sm:$0xff] %vm3835_vm14, %v3818_v6  ;;  %v3816_v20 = vpop.permute.xlu0 %3815 }
 0x300   : > { %3850 = vst.msk [vmem:[%s4303_s20 + $0x70] sm:$0xff] %vm3835_vm14, %v3816_v20 }
 0x301 PF: > { %s12_s9 = sadd.s32 1, %s4259_s9  }
 0x302   : > { %p9_p4 = scmp.ge.s32.totalorder %s12_s9, 6  }
 0x304   :  { %11 = sbr.rel (!%p9_p4) target bundleno = 1 (0x1), region = 58 }

</bundles_post_ra>
